<compile_context>
chip_gen: v6e
topology: v6e:2x2x1
jax: 0.10.0
libtpu: 0.0.40
codegen_flags: <defaults>
</compile_context>

<pallas_src>
import math
import jax
import jax.numpy as jnp
from jax.experimental import pallas as pl
from jax.experimental.pallas import tpu as pltpu

# ----------------------------- config ---------------------------------------
B       = 2                      # batch
C       = 3                      # input channels
IMG     = 16                     # spatial size (IMG x IMG)
PATCH   = 4                      # patch size  -> 4x4 grid of patches
GRID    = IMG // PATCH
N_TOK   = GRID * GRID            # 16 tokens
BT      = B * N_TOK              # 32 tokens with batch folded
P_DIM   = C * PATCH * PATCH      # 48 flattened-patch dim
D       = 32                     # hidden size
HEADS   = 4
HD      = D // HEADS             # 8
BH      = B * HEADS              # 8 head-batched groups
MLP     = 64                     # mlp dim
LAYERS  = 2
EPS     = 1e-6
SCALE   = 1.0 / math.sqrt(HD)

# row layout of the packed small-vector array `vecs` (per layer, (8, 3D) f32)
_ROW_LN1G, _ROW_LN1B, _ROW_BQKV, _ROW_BO = 0, 1, 2, 3
_ROW_LN2G, _ROW_LN2B, _ROW_B1, _ROW_B2 = 4, 5, 6, 7


# --------------------------- in-kernel helpers -------------------------------
def _layer_norm(x, g, b):
    # x: (T, D) f32, g/b: (1, D) f32
    mu = jnp.mean(x, axis=-1, keepdims=True)
    var = jnp.mean((x - mu) * (x - mu), axis=-1, keepdims=True)
    return (x - mu) * jax.lax.rsqrt(var + EPS) * g + b


def _gelu(x):
    # TODO(synk): PyTorch's default nn.GELU uses the exact erf form; tanh
    # approximation used here (erf has no clean Mosaic lowering).
    c = math.sqrt(2.0 / math.pi)
    return 0.5 * x * (1.0 + jnp.tanh(c * (x + 0.044715 * x * x * x)))


# ------------------------------ fused kernel ---------------------------------
def transformer_kernel(patches_ref, embed_ref, pw_ref, wrow_ref, w2_ref,
                       vecs_ref, out_ref):
    bf16 = jnp.bfloat16

    # ---- Embeddings: Conv2d(k=stride=PATCH) as matmul + (pre-tiled) pos+bias
    x = jnp.dot(patches_ref[...], pw_ref[...],
                preferred_element_type=jnp.float32)               # (BT, D) f32
    x = x + embed_ref[0:BT, :]                                    # pos + conv bias

    # ---- Encoder: LAYERS pre-LN blocks, all weights resident in VMEM -------
    # TODO(synk): dropout from the reference ViT is omitted (eval-mode forward);
    # per-layer attention weights are not returned.
    for li in range(LAYERS):
        v = vecs_ref[li]                       # (8, 3D) f32 small-vector pack
        wrow = wrow_ref[li]                    # (D, 3D + D + MLP) bf16
        wqkv = wrow[:, 0:3 * D]                # (D, 3D)
        wo   = wrow[:, 3 * D:4 * D]            # (D, D)
        w1   = wrow[:, 4 * D:4 * D + MLP]      # (D, MLP)
        w2   = w2_ref[li]                      # (MLP, D) bf16

        ln1_g, ln1_b = v[_ROW_LN1G:_ROW_LN1G + 1, :D], v[_ROW_LN1B:_ROW_LN1B + 1, :D]
        bqkv         = v[_ROW_BQKV:_ROW_BQKV + 1, :]
        bo           = v[_ROW_BO:_ROW_BO + 1, :D]
        ln2_g, ln2_b = v[_ROW_LN2G:_ROW_LN2G + 1, :D], v[_ROW_LN2B:_ROW_LN2B + 1, :D]
        b1           = v[_ROW_B1:_ROW_B1 + 1, :MLP]
        b2           = v[_ROW_B2:_ROW_B2 + 1, :D]

        # --- multi-head self-attention (pre-LN); 1/sqrt(HD) folded into Q ---
        xn = _layer_norm(x, ln1_g, ln1_b)
        qkv = jnp.dot(xn.astype(bf16), wqkv,
                      preferred_element_type=jnp.float32) + bqkv  # (BT, 3D) f32
        qkv3 = qkv.reshape(B, N_TOK, 3 * D)

        # Stack heads on the leading axis -> ONE batched score matmul, ONE
        # softmax, ONE batched context matmul over all B*HEADS groups.
        q_all = jnp.concatenate(
            [qkv3[:, :, h * HD:(h + 1) * HD] for h in range(HEADS)], axis=0)
        k_all = jnp.concatenate(
            [qkv3[:, :, D + h * HD:D + (h + 1) * HD] for h in range(HEADS)], axis=0)
        v_all = jnp.concatenate(
            [qkv3[:, :, 2 * D + h * HD:2 * D + (h + 1) * HD] for h in range(HEADS)],
            axis=0)                                               # (BH, S, HD)

        s = jnp.einsum('zqd,zkd->zqk', q_all.astype(bf16), k_all.astype(bf16),
                       preferred_element_type=jnp.float32)        # (BH, S, S)
        s = s - jnp.max(s, axis=-1, keepdims=True)
        p = jnp.exp(s)
        p = p * pl.reciprocal(jnp.sum(p, axis=-1, keepdims=True), approx=True)
        ctx = jnp.einsum('zqk,zkd->zqd', p.astype(bf16), v_all.astype(bf16),
                         preferred_element_type=jnp.float32)      # (BH, S, HD)

        # head-major reassembly to (BT, D), then ONE (BT,D)@(D,D) out-proj.
        ctx = jnp.concatenate([ctx[h * B:(h + 1) * B] for h in range(HEADS)],
                              axis=-1)                            # (B, S, D)
        ctx = ctx.reshape(BT, D)
        x = x + jnp.dot(ctx.astype(bf16), wo,
                        preferred_element_type=jnp.float32) + bo

        # --- MLP (pre-LN) ---
        xn2 = _layer_norm(x, ln2_g, ln2_b)
        hid = jnp.dot(xn2.astype(bf16), w1,
                      preferred_element_type=jnp.float32) + b1
        hid = _gelu(hid)
        x = x + jnp.dot(hid.astype(bf16), w2,
                        preferred_element_type=jnp.float32) + b2

    # ---- final LayerNorm (gain/bias live in rows BT / BT+1 of embed) ----
    out_ref[...] = _layer_norm(x, embed_ref[BT:BT + 1, :], embed_ref[BT + 1:BT + 2, :])


# --------------------------- pallas_call wrapper ------------------------------
def transformer_pallas(patches, p):
    # Grid-less: working set (~100 KB) is resident in VMEM for the single
    # launch; explicit VMEM BlockSpecs -> one up-front DMA per (packed) operand.
    vmem = lambda: pl.BlockSpec(memory_space=pltpu.MemorySpace.VMEM)
    return pl.pallas_call(
        transformer_kernel,
        out_shape=jax.ShapeDtypeStruct((BT, D), jnp.float32),
        in_specs=[vmem() for _ in range(6)],
        out_specs=vmem(),
    )(patches, p["embed"], p["patch_w"], p["w_row"], p["w2"], p["vecs"])


# ------------------------------ parameters ------------------------------------
def init_params(key):
    """Parameters mirroring the PyTorch module layout (per-layer dicts)."""
    def nrm(k, shape, scale=0.02):
        return (scale * jax.random.normal(k, shape)).astype(jnp.float32)

    keys = jax.random.split(key, 4 + LAYERS)
    params = {
        "patch_w": nrm(keys[0], (P_DIM, D)),
        "patch_b": jnp.zeros((1, D), jnp.float32),
        "pos": nrm(keys[1], (1, N_TOK, D)),
        "final_g": jnp.ones((1, D), jnp.float32),
        "final_b": jnp.zeros((1, D), jnp.float32),
        "layers": [],
    }
    for li in range(LAYERS):
        lk = jax.random.split(keys[4 + li], 6)
        params["layers"].append({
            "ln1_g": jnp.ones((1, D), jnp.float32),
            "ln1_b": jnp.zeros((1, D), jnp.float32),
            "wq": nrm(lk[0], (D, D)), "bq": jnp.zeros((1, D), jnp.float32),
            "wk": nrm(lk[1], (D, D)), "bk": jnp.zeros((1, D), jnp.float32),
            "wv": nrm(lk[2], (D, D)), "bv": jnp.zeros((1, D), jnp.float32),
            "wo": nrm(lk[3], (D, D)), "bo": jnp.zeros((1, D), jnp.float32),
            "ln2_g": jnp.ones((1, D), jnp.float32),
            "ln2_b": jnp.zeros((1, D), jnp.float32),
            "w1": nrm(lk[4], (D, MLP)), "b1": jnp.zeros((1, MLP), jnp.float32),
            "w2": nrm(lk[5], (MLP, D)), "b2": jnp.zeros((1, D), jnp.float32),
        })
    return params


def prepare_params(params):
    """One-time host prep: fuse QKV + fold softmax scale, stack per-layer
    weights (bf16 for MXU), pack all tiny bias/LN vectors, pre-tile positions."""
    layers = params["layers"]

    def stack(name):
        return jnp.stack([lp[name] for lp in layers], axis=0)

    # Fused QKV with 1/sqrt(HD) folded into the Q projection.
    wq = stack("wq") * SCALE
    bq = stack("bq") * SCALE
    wqkv = jnp.concatenate([wq, stack("wk"), stack("wv")], axis=-1)   # (L, D, 3D)
    bqkv = jnp.concatenate([bq, stack("bk"), stack("bv")], axis=-1)   # (L, 1, 3D)

    # All D-row weight matrices packed along lanes: [wqkv | wo | w1].
    w_row = jnp.concatenate([wqkv, stack("wo"), stack("w1")],
                            axis=-1).astype(jnp.bfloat16)             # (L, D, 3D+D+MLP)
    w2 = stack("w2").astype(jnp.bfloat16)                             # (L, MLP, D)

    # Small per-layer vectors packed into one (L, 8, 3D) f32 array.
    W = 3 * D
    def pad_w(v):
        return jnp.pad(v, ((0, 0), (0, 0), (0, W - v.shape[-1])))
    vecs = jnp.concatenate([
        pad_w(stack("ln1_g")), pad_w(stack("ln1_b")),
        bqkv,
        pad_w(stack("bo")),
        pad_w(stack("ln2_g")), pad_w(stack("ln2_b")),
        pad_w(stack("b1")), pad_w(stack("b2")),
    ], axis=1)                                                        # (L, 8, 3D)

    # Positions pre-tiled over the batch + conv bias folded in; final-LN
    # gain/bias appended as extra rows (pad to a sublane-aligned 40 rows).
    pos = params["pos"].reshape(N_TOK, D)
    pos_pb = jnp.tile(pos, (B, 1)) + params["patch_b"]                # (BT, D)
    embed = jnp.concatenate([pos_pb, params["final_g"], params["final_b"],
                             jnp.zeros((6, D), jnp.float32)], axis=0)  # (BT+8, D)

    return {
        "patch_w": params["patch_w"].astype(jnp.bfloat16),            # (P_DIM, D)
        "embed": embed,
        "w_row": w_row,
        "w2": w2,
        "vecs": vecs,
    }


# ------------------------------ forward ---------------------------------------
@jax.jit
def transformer_forward(x_nchw, p):
    # Embeddings glue: a stride==kernel Conv2d is a matmul over flattened
    # patches; feature order (c, ph, pw) matches the flattened conv weight.
    xr = x_nchw.reshape(B, C, GRID, PATCH, GRID, PATCH)
    patches = xr.transpose(0, 2, 4, 1, 3, 5).reshape(BT, P_DIM)       # (B*S, C*P*P)
    patches = patches.astype(jnp.bfloat16)                            # MXU-native
    y = transformer_pallas(patches, p)                                # (BT, D) f32
    return y.reshape(B, N_TOK, D)                                     # host-side, free


# -------------------------------- main -----------------------------------------
if __name__ == "__main__":
    key = jax.random.PRNGKey(0)
    k_x, k_p = jax.random.split(key)
    x = jax.random.normal(k_x, (B, C, IMG, IMG), dtype=jnp.float32)   # NCHW
    params = prepare_params(init_params(k_p))

    out = transformer_forward(x, params)
    out = jax.block_until_ready(out)
    assert out.shape == (B, N_TOK, D)
    assert bool(jnp.isfinite(out).all())
    print("KERNEL_OK")
</pallas_src>

<mosaic_0001>
module attributes {stable_mosaic.version = 11 : i64} {
  func.func @transformer_kernel(%arg0: memref<32x48xbf16, #tpu.memory_space<vmem>>, %arg1: memref<40x32xf32, #tpu.memory_space<vmem>>, %arg2: memref<48x32xbf16, #tpu.memory_space<vmem>>, %arg3: memref<2x32x192xbf16, #tpu.memory_space<vmem>>, %arg4: memref<2x64x32xbf16, #tpu.memory_space<vmem>>, %arg5: memref<2x8x96xf32, #tpu.memory_space<vmem>>, %arg6: memref<32x32xf32, #tpu.memory_space<vmem>>) attributes {dimension_semantics = [], scalar_prefetch = 0 : i64, scratch_operands = 0 : i64, tpu.core_type = #tpu.core_type<tc>} {
    %c0 = arith.constant 0 : index
    %c0_0 = arith.constant 0 : index
    %0 = vector.load %arg0[%c0, %c0_0] : memref<32x48xbf16, #tpu.memory_space<vmem>>, vector<32x48xbf16>
    %c0_1 = arith.constant 0 : index
    %c0_2 = arith.constant 0 : index
    %1 = vector.load %arg2[%c0_1, %c0_2] : memref<48x32xbf16, #tpu.memory_space<vmem>>, vector<48x32xbf16>
    %cst = arith.constant dense<0.000000e+00> : vector<32x32xf32>
    %2 = tpu.matmul %0, %1, %cst {dimension_numbers = #tpu.dot_dimension_numbers<[1], [0], [0], [1], [0, 0, 1, 1], [], []>} : vector<32x48xbf16>, vector<48x32xbf16>, vector<32x32xf32> -> vector<32x32xf32>
    %c0_3 = arith.constant 0 : index
    %c0_4 = arith.constant 0 : index
    %3 = vector.load %arg1[%c0_3, %c0_4] : memref<40x32xf32, #tpu.memory_space<vmem>>, vector<32x32xf32>
    %4 = arith.addf %2, %3 : vector<32x32xf32>
    %c0_5 = arith.constant 0 : index
    %c0_6 = arith.constant 0 : index
    %c0_7 = arith.constant 0 : index
    %5 = vector.load %arg5[%c0_5, %c0_6, %c0_7] : memref<2x8x96xf32, #tpu.memory_space<vmem>>, vector<1x8x96xf32>
    %6 = vector.shape_cast %5 : vector<1x8x96xf32> to vector<8x96xf32>
    %c0_8 = arith.constant 0 : index
    %c0_9 = arith.constant 0 : index
    %c0_10 = arith.constant 0 : index
    %7 = vector.load %arg3[%c0_8, %c0_9, %c0_10] : memref<2x32x192xbf16, #tpu.memory_space<vmem>>, vector<1x32x192xbf16>
    %8 = vector.shape_cast %7 : vector<1x32x192xbf16> to vector<32x192xbf16>
    %9 = vector.extract_strided_slice %8 {offsets = [0, 0], sizes = [32, 96], strides = [1, 1]} : vector<32x192xbf16> to vector<32x96xbf16>
    %10 = vector.extract_strided_slice %8 {offsets = [0, 96], sizes = [32, 32], strides = [1, 1]} : vector<32x192xbf16> to vector<32x32xbf16>
    %11 = vector.extract_strided_slice %8 {offsets = [0, 128], sizes = [32, 64], strides = [1, 1]} : vector<32x192xbf16> to vector<32x64xbf16>
    %c0_11 = arith.constant 0 : index
    %c0_12 = arith.constant 0 : index
    %c0_13 = arith.constant 0 : index
    %12 = vector.load %arg4[%c0_11, %c0_12, %c0_13] : memref<2x64x32xbf16, #tpu.memory_space<vmem>>, vector<1x64x32xbf16>
    %13 = vector.shape_cast %12 : vector<1x64x32xbf16> to vector<64x32xbf16>
    %14 = vector.extract_strided_slice %6 {offsets = [0, 0], sizes = [1, 32], strides = [1, 1]} : vector<8x96xf32> to vector<1x32xf32>
    %15 = vector.extract_strided_slice %6 {offsets = [1, 0], sizes = [1, 32], strides = [1, 1]} : vector<8x96xf32> to vector<1x32xf32>
    %16 = vector.extract_strided_slice %6 {offsets = [2, 0], sizes = [1, 96], strides = [1, 1]} : vector<8x96xf32> to vector<1x96xf32>
    %17 = vector.extract_strided_slice %6 {offsets = [3, 0], sizes = [1, 32], strides = [1, 1]} : vector<8x96xf32> to vector<1x32xf32>
    %18 = vector.extract_strided_slice %6 {offsets = [4, 0], sizes = [1, 32], strides = [1, 1]} : vector<8x96xf32> to vector<1x32xf32>
    %19 = vector.extract_strided_slice %6 {offsets = [5, 0], sizes = [1, 32], strides = [1, 1]} : vector<8x96xf32> to vector<1x32xf32>
    %20 = vector.extract_strided_slice %6 {offsets = [6, 0], sizes = [1, 64], strides = [1, 1]} : vector<8x96xf32> to vector<1x64xf32>
    %21 = vector.extract_strided_slice %6 {offsets = [7, 0], sizes = [1, 32], strides = [1, 1]} : vector<8x96xf32> to vector<1x32xf32>
    %cst_14 = arith.constant dense<0.000000e+00> : vector<32xf32>
    %22 = vector.multi_reduction <add>, %4, %cst_14 [1] : vector<32x32xf32> to vector<32xf32>
    %23 = vector.shape_cast %22 : vector<32xf32> to vector<32x1xf32>
    %cst_15 = arith.constant 3.200000e+01 : f32
    %24 = vector.broadcast %cst_15 : f32 to vector<32x1xf32>
    %25 = arith.divf %23, %24 : vector<32x1xf32>
    %26 = vector.broadcast %25 : vector<32x1xf32> to vector<32x32xf32>
    %27 = arith.subf %4, %26 : vector<32x32xf32>
    %28 = vector.broadcast %25 : vector<32x1xf32> to vector<32x32xf32>
    %29 = arith.subf %4, %28 : vector<32x32xf32>
    %30 = arith.mulf %27, %29 : vector<32x32xf32>
    %cst_16 = arith.constant dense<0.000000e+00> : vector<32xf32>
    %31 = vector.multi_reduction <add>, %30, %cst_16 [1] : vector<32x32xf32> to vector<32xf32>
    %32 = vector.shape_cast %31 : vector<32xf32> to vector<32x1xf32>
    %cst_17 = arith.constant 3.200000e+01 : f32
    %33 = vector.broadcast %cst_17 : f32 to vector<32x1xf32>
    %34 = arith.divf %32, %33 : vector<32x1xf32>
    %35 = vector.broadcast %25 : vector<32x1xf32> to vector<32x32xf32>
    %36 = arith.subf %4, %35 : vector<32x32xf32>
    %cst_18 = arith.constant 9.99999997E-7 : f32
    %37 = vector.broadcast %cst_18 : f32 to vector<32x1xf32>
    %38 = arith.addf %34, %37 : vector<32x1xf32>
    %39 = math.rsqrt %38 : vector<32x1xf32>
    %40 = vector.broadcast %39 : vector<32x1xf32> to vector<32x32xf32>
    %41 = arith.mulf %36, %40 : vector<32x32xf32>
    %42 = vector.broadcast %14 : vector<1x32xf32> to vector<32x32xf32>
    %43 = arith.mulf %41, %42 : vector<32x32xf32>
    %44 = vector.broadcast %15 : vector<1x32xf32> to vector<32x32xf32>
    %45 = arith.addf %43, %44 : vector<32x32xf32>
    %46 = arith.truncf %45 : vector<32x32xf32> to vector<32x32xbf16>
    %cst_19 = arith.constant dense<0.000000e+00> : vector<32x96xf32>
    %47 = tpu.matmul %46, %9, %cst_19 {dimension_numbers = #tpu.dot_dimension_numbers<[1], [0], [0], [1], [0, 0, 1, 1], [], []>} : vector<32x32xbf16>, vector<32x96xbf16>, vector<32x96xf32> -> vector<32x96xf32>
    %48 = vector.broadcast %16 : vector<1x96xf32> to vector<32x96xf32>
    %49 = arith.addf %47, %48 : vector<32x96xf32>
    %50 = vector.shape_cast %49 : vector<32x96xf32> to vector<2x16x96xf32>
    %51 = vector.extract_strided_slice %50 {offsets = [0, 0, 0], sizes = [2, 16, 8], strides = [1, 1, 1]} : vector<2x16x96xf32> to vector<2x16x8xf32>
    %52 = vector.extract_strided_slice %50 {offsets = [0, 0, 8], sizes = [2, 16, 8], strides = [1, 1, 1]} : vector<2x16x96xf32> to vector<2x16x8xf32>
    %53 = vector.extract_strided_slice %50 {offsets = [0, 0, 16], sizes = [2, 16, 8], strides = [1, 1, 1]} : vector<2x16x96xf32> to vector<2x16x8xf32>
    %54 = vector.extract_strided_slice %50 {offsets = [0, 0, 24], sizes = [2, 16, 8], strides = [1, 1, 1]} : vector<2x16x96xf32> to vector<2x16x8xf32>
    %55 = tpu.concatenate %51, %52, %53, %54 in 0 : vector<2x16x8xf32>, vector<2x16x8xf32>, vector<2x16x8xf32>, vector<2x16x8xf32> -> vector<8x16x8xf32>
    %56 = vector.extract_strided_slice %50 {offsets = [0, 0, 32], sizes = [2, 16, 8], strides = [1, 1, 1]} : vector<2x16x96xf32> to vector<2x16x8xf32>
    %57 = vector.extract_strided_slice %50 {offsets = [0, 0, 40], sizes = [2, 16, 8], strides = [1, 1, 1]} : vector<2x16x96xf32> to vector<2x16x8xf32>
    %58 = vector.extract_strided_slice %50 {offsets = [0, 0, 48], sizes = [2, 16, 8], strides = [1, 1, 1]} : vector<2x16x96xf32> to vector<2x16x8xf32>
    %59 = vector.extract_strided_slice %50 {offsets = [0, 0, 56], sizes = [2, 16, 8], strides = [1, 1, 1]} : vector<2x16x96xf32> to vector<2x16x8xf32>
    %60 = tpu.concatenate %56, %57, %58, %59 in 0 : vector<2x16x8xf32>, vector<2x16x8xf32>, vector<2x16x8xf32>, vector<2x16x8xf32> -> vector<8x16x8xf32>
    %61 = vector.extract_strided_slice %50 {offsets = [0, 0, 64], sizes = [2, 16, 8], strides = [1, 1, 1]} : vector<2x16x96xf32> to vector<2x16x8xf32>
    %62 = vector.extract_strided_slice %50 {offsets = [0, 0, 72], sizes = [2, 16, 8], strides = [1, 1, 1]} : vector<2x16x96xf32> to vector<2x16x8xf32>
    %63 = vector.extract_strided_slice %50 {offsets = [0, 0, 80], sizes = [2, 16, 8], strides = [1, 1, 1]} : vector<2x16x96xf32> to vector<2x16x8xf32>
    %64 = vector.extract_strided_slice %50 {offsets = [0, 0, 88], sizes = [2, 16, 8], strides = [1, 1, 1]} : vector<2x16x96xf32> to vector<2x16x8xf32>
    %65 = tpu.concatenate %61, %62, %63, %64 in 0 : vector<2x16x8xf32>, vector<2x16x8xf32>, vector<2x16x8xf32>, vector<2x16x8xf32> -> vector<8x16x8xf32>
    %66 = arith.truncf %55 : vector<8x16x8xf32> to vector<8x16x8xbf16>
    %67 = arith.truncf %60 : vector<8x16x8xf32> to vector<8x16x8xbf16>
    "tpu.trace_start"() <{level = 10 : i32, message = "zqd,zkd->zqk"}> : () -> ()
    %cst_20 = arith.constant dense<0.000000e+00> : vector<8x16x16xf32>
    %68 = tpu.matmul %66, %67, %cst_20 {dimension_numbers = #tpu.dot_dimension_numbers<[2], [2], [1], [1], [0, 0, 0, 1, 1, 1], [0], [0]>} : vector<8x16x8xbf16>, vector<8x16x8xbf16>, vector<8x16x16xf32> -> vector<8x16x16xf32>
    "tpu.trace_stop"() : () -> ()
    %cst_21 = arith.constant dense<0xFF800000> : vector<8x16xf32>
    %69 = vector.multi_reduction <maximumf>, %68, %cst_21 [2] : vector<8x16x16xf32> to vector<8x16xf32>
    %70 = vector.shape_cast %69 : vector<8x16xf32> to vector<8x16x1xf32>
    %71 = vector.broadcast %70 : vector<8x16x1xf32> to vector<8x16x16xf32>
    %72 = arith.subf %68, %71 : vector<8x16x16xf32>
    %73 = math.exp %72 : vector<8x16x16xf32>
    %cst_22 = arith.constant dense<0.000000e+00> : vector<8x16xf32>
    %74 = vector.multi_reduction <add>, %73, %cst_22 [2] : vector<8x16x16xf32> to vector<8x16xf32>
    %75 = vector.shape_cast %74 : vector<8x16xf32> to vector<8x16x1xf32>
    %76 = tpu.reciprocal %75 {approx = true} : vector<8x16x1xf32> -> vector<8x16x1xf32>
    %77 = vector.broadcast %76 : vector<8x16x1xf32> to vector<8x16x16xf32>
    %78 = arith.mulf %73, %77 : vector<8x16x16xf32>
    %79 = arith.truncf %78 : vector<8x16x16xf32> to vector<8x16x16xbf16>
    %80 = arith.truncf %65 : vector<8x16x8xf32> to vector<8x16x8xbf16>
    "tpu.trace_start"() <{level = 10 : i32, message = "zqk,zkd->zqd"}> : () -> ()
    %cst_23 = arith.constant dense<0.000000e+00> : vector<8x16x8xf32>
    %81 = tpu.matmul %79, %80, %cst_23 {dimension_numbers = #tpu.dot_dimension_numbers<[2], [1], [1], [2], [0, 0, 0, 1, 1, 2], [0], [0]>} : vector<8x16x16xbf16>, vector<8x16x8xbf16>, vector<8x16x8xf32> -> vector<8x16x8xf32>
    "tpu.trace_stop"() : () -> ()
    %82 = vector.extract_strided_slice %81 {offsets = [0, 0, 0], sizes = [2, 16, 8], strides = [1, 1, 1]} : vector<8x16x8xf32> to vector<2x16x8xf32>
    %83 = vector.extract_strided_slice %81 {offsets = [2, 0, 0], sizes = [2, 16, 8], strides = [1, 1, 1]} : vector<8x16x8xf32> to vector<2x16x8xf32>
    %84 = vector.extract_strided_slice %81 {offsets = [4, 0, 0], sizes = [2, 16, 8], strides = [1, 1, 1]} : vector<8x16x8xf32> to vector<2x16x8xf32>
    %85 = vector.extract_strided_slice %81 {offsets = [6, 0, 0], sizes = [2, 16, 8], strides = [1, 1, 1]} : vector<8x16x8xf32> to vector<2x16x8xf32>
    %86 = tpu.concatenate %82, %83, %84, %85 in 2 : vector<2x16x8xf32>, vector<2x16x8xf32>, vector<2x16x8xf32>, vector<2x16x8xf32> -> vector<2x16x32xf32>
    %87 = vector.shape_cast %86 : vector<2x16x32xf32> to vector<32x32xf32>
    %88 = arith.truncf %87 : vector<32x32xf32> to vector<32x32xbf16>
    %cst_24 = arith.constant dense<0.000000e+00> : vector<32x32xf32>
    %89 = tpu.matmul %88, %10, %cst_24 {dimension_numbers = #tpu.dot_dimension_numbers<[1], [0], [0], [1], [0, 0, 1, 1], [], []>} : vector<32x32xbf16>, vector<32x32xbf16>, vector<32x32xf32> -> vector<32x32xf32>
    %90 = arith.addf %4, %89 : vector<32x32xf32>
    %91 = vector.broadcast %17 : vector<1x32xf32> to vector<32x32xf32>
    %92 = arith.addf %90, %91 : vector<32x32xf32>
    %cst_25 = arith.constant dense<0.000000e+00> : vector<32xf32>
    %93 = vector.multi_reduction <add>, %92, %cst_25 [1] : vector<32x32xf32> to vector<32xf32>
    %94 = vector.shape_cast %93 : vector<32xf32> to vector<32x1xf32>
    %cst_26 = arith.constant 3.200000e+01 : f32
    %95 = vector.broadcast %cst_26 : f32 to vector<32x1xf32>
    %96 = arith.divf %94, %95 : vector<32x1xf32>
    %97 = vector.broadcast %96 : vector<32x1xf32> to vector<32x32xf32>
    %98 = arith.subf %92, %97 : vector<32x32xf32>
    %99 = vector.broadcast %96 : vector<32x1xf32> to vector<32x32xf32>
    %100 = arith.subf %92, %99 : vector<32x32xf32>
    %101 = arith.mulf %98, %100 : vector<32x32xf32>
    %cst_27 = arith.constant dense<0.000000e+00> : vector<32xf32>
    %102 = vector.multi_reduction <add>, %101, %cst_27 [1] : vector<32x32xf32> to vector<32xf32>
    %103 = vector.shape_cast %102 : vector<32xf32> to vector<32x1xf32>
    %cst_28 = arith.constant 3.200000e+01 : f32
    %104 = vector.broadcast %cst_28 : f32 to vector<32x1xf32>
    %105 = arith.divf %103, %104 : vector<32x1xf32>
    %106 = vector.broadcast %96 : vector<32x1xf32> to vector<32x32xf32>
    %107 = arith.subf %92, %106 : vector<32x32xf32>
    %cst_29 = arith.constant 9.99999997E-7 : f32
    %108 = vector.broadcast %cst_29 : f32 to vector<32x1xf32>
    %109 = arith.addf %105, %108 : vector<32x1xf32>
    %110 = math.rsqrt %109 : vector<32x1xf32>
    %111 = vector.broadcast %110 : vector<32x1xf32> to vector<32x32xf32>
    %112 = arith.mulf %107, %111 : vector<32x32xf32>
    %113 = vector.broadcast %18 : vector<1x32xf32> to vector<32x32xf32>
    %114 = arith.mulf %112, %113 : vector<32x32xf32>
    %115 = vector.broadcast %19 : vector<1x32xf32> to vector<32x32xf32>
    %116 = arith.addf %114, %115 : vector<32x32xf32>
    %117 = arith.truncf %116 : vector<32x32xf32> to vector<32x32xbf16>
    %cst_30 = arith.constant dense<0.000000e+00> : vector<32x64xf32>
    %118 = tpu.matmul %117, %11, %cst_30 {dimension_numbers = #tpu.dot_dimension_numbers<[1], [0], [0], [1], [0, 0, 1, 1], [], []>} : vector<32x32xbf16>, vector<32x64xbf16>, vector<32x64xf32> -> vector<32x64xf32>
    %119 = vector.broadcast %20 : vector<1x64xf32> to vector<32x64xf32>
    %120 = arith.addf %118, %119 : vector<32x64xf32>
    %cst_31 = arith.constant 5.000000e-01 : f32
    %121 = vector.broadcast %cst_31 : f32 to vector<32x64xf32>
    %122 = arith.mulf %121, %120 : vector<32x64xf32>
    %cst_32 = arith.constant 4.471500e-02 : f32
    %123 = vector.broadcast %cst_32 : f32 to vector<32x64xf32>
    %124 = arith.mulf %123, %120 : vector<32x64xf32>
    %125 = arith.mulf %124, %120 : vector<32x64xf32>
    %126 = arith.mulf %125, %120 : vector<32x64xf32>
    %127 = arith.addf %120, %126 : vector<32x64xf32>
    %cst_33 = arith.constant 0.797884583 : f32
    %128 = vector.broadcast %cst_33 : f32 to vector<32x64xf32>
    %129 = arith.mulf %128, %127 : vector<32x64xf32>
    %130 = math.tanh %129 : vector<32x64xf32>
    %cst_34 = arith.constant 1.000000e+00 : f32
    %131 = vector.broadcast %cst_34 : f32 to vector<32x64xf32>
    %132 = arith.addf %131, %130 : vector<32x64xf32>
    %133 = arith.mulf %122, %132 : vector<32x64xf32>
    %134 = arith.truncf %133 : vector<32x64xf32> to vector<32x64xbf16>
    %cst_35 = arith.constant dense<0.000000e+00> : vector<32x32xf32>
    %135 = tpu.matmul %134, %13, %cst_35 {dimension_numbers = #tpu.dot_dimension_numbers<[1], [0], [0], [1], [0, 0, 1, 1], [], []>} : vector<32x64xbf16>, vector<64x32xbf16>, vector<32x32xf32> -> vector<32x32xf32>
    %136 = arith.addf %92, %135 : vector<32x32xf32>
    %137 = vector.broadcast %21 : vector<1x32xf32> to vector<32x32xf32>
    %138 = arith.addf %136, %137 : vector<32x32xf32>
    %c1 = arith.constant 1 : index
    %c0_36 = arith.constant 0 : index
    %c0_37 = arith.constant 0 : index
    %139 = vector.load %arg5[%c1, %c0_36, %c0_37] : memref<2x8x96xf32, #tpu.memory_space<vmem>>, vector<1x8x96xf32>
    %140 = vector.shape_cast %139 : vector<1x8x96xf32> to vector<8x96xf32>
    %c1_38 = arith.constant 1 : index
    %c0_39 = arith.constant 0 : index
    %c0_40 = arith.constant 0 : index
    %141 = vector.load %arg3[%c1_38, %c0_39, %c0_40] : memref<2x32x192xbf16, #tpu.memory_space<vmem>>, vector<1x32x192xbf16>
    %142 = vector.shape_cast %141 : vector<1x32x192xbf16> to vector<32x192xbf16>
    %143 = vector.extract_strided_slice %142 {offsets = [0, 0], sizes = [32, 96], strides = [1, 1]} : vector<32x192xbf16> to vector<32x96xbf16>
    %144 = vector.extract_strided_slice %142 {offsets = [0, 96], sizes = [32, 32], strides = [1, 1]} : vector<32x192xbf16> to vector<32x32xbf16>
    %145 = vector.extract_strided_slice %142 {offsets = [0, 128], sizes = [32, 64], strides = [1, 1]} : vector<32x192xbf16> to vector<32x64xbf16>
    %c1_41 = arith.constant 1 : index
    %c0_42 = arith.constant 0 : index
    %c0_43 = arith.constant 0 : index
    %146 = vector.load %arg4[%c1_41, %c0_42, %c0_43] : memref<2x64x32xbf16, #tpu.memory_space<vmem>>, vector<1x64x32xbf16>
    %147 = vector.shape_cast %146 : vector<1x64x32xbf16> to vector<64x32xbf16>
    %148 = vector.extract_strided_slice %140 {offsets = [0, 0], sizes = [1, 32], strides = [1, 1]} : vector<8x96xf32> to vector<1x32xf32>
    %149 = vector.extract_strided_slice %140 {offsets = [1, 0], sizes = [1, 32], strides = [1, 1]} : vector<8x96xf32> to vector<1x32xf32>
    %150 = vector.extract_strided_slice %140 {offsets = [2, 0], sizes = [1, 96], strides = [1, 1]} : vector<8x96xf32> to vector<1x96xf32>
    %151 = vector.extract_strided_slice %140 {offsets = [3, 0], sizes = [1, 32], strides = [1, 1]} : vector<8x96xf32> to vector<1x32xf32>
    %152 = vector.extract_strided_slice %140 {offsets = [4, 0], sizes = [1, 32], strides = [1, 1]} : vector<8x96xf32> to vector<1x32xf32>
    %153 = vector.extract_strided_slice %140 {offsets = [5, 0], sizes = [1, 32], strides = [1, 1]} : vector<8x96xf32> to vector<1x32xf32>
    %154 = vector.extract_strided_slice %140 {offsets = [6, 0], sizes = [1, 64], strides = [1, 1]} : vector<8x96xf32> to vector<1x64xf32>
    %155 = vector.extract_strided_slice %140 {offsets = [7, 0], sizes = [1, 32], strides = [1, 1]} : vector<8x96xf32> to vector<1x32xf32>
    %cst_44 = arith.constant dense<0.000000e+00> : vector<32xf32>
    %156 = vector.multi_reduction <add>, %138, %cst_44 [1] : vector<32x32xf32> to vector<32xf32>
    %157 = vector.shape_cast %156 : vector<32xf32> to vector<32x1xf32>
    %cst_45 = arith.constant 3.200000e+01 : f32
    %158 = vector.broadcast %cst_45 : f32 to vector<32x1xf32>
    %159 = arith.divf %157, %158 : vector<32x1xf32>
    %160 = vector.broadcast %159 : vector<32x1xf32> to vector<32x32xf32>
    %161 = arith.subf %138, %160 : vector<32x32xf32>
    %162 = vector.broadcast %159 : vector<32x1xf32> to vector<32x32xf32>
    %163 = arith.subf %138, %162 : vector<32x32xf32>
    %164 = arith.mulf %161, %163 : vector<32x32xf32>
    %cst_46 = arith.constant dense<0.000000e+00> : vector<32xf32>
    %165 = vector.multi_reduction <add>, %164, %cst_46 [1] : vector<32x32xf32> to vector<32xf32>
    %166 = vector.shape_cast %165 : vector<32xf32> to vector<32x1xf32>
    %cst_47 = arith.constant 3.200000e+01 : f32
    %167 = vector.broadcast %cst_47 : f32 to vector<32x1xf32>
    %168 = arith.divf %166, %167 : vector<32x1xf32>
    %169 = vector.broadcast %159 : vector<32x1xf32> to vector<32x32xf32>
    %170 = arith.subf %138, %169 : vector<32x32xf32>
    %cst_48 = arith.constant 9.99999997E-7 : f32
    %171 = vector.broadcast %cst_48 : f32 to vector<32x1xf32>
    %172 = arith.addf %168, %171 : vector<32x1xf32>
    %173 = math.rsqrt %172 : vector<32x1xf32>
    %174 = vector.broadcast %173 : vector<32x1xf32> to vector<32x32xf32>
    %175 = arith.mulf %170, %174 : vector<32x32xf32>
    %176 = vector.broadcast %148 : vector<1x32xf32> to vector<32x32xf32>
    %177 = arith.mulf %175, %176 : vector<32x32xf32>
    %178 = vector.broadcast %149 : vector<1x32xf32> to vector<32x32xf32>
    %179 = arith.addf %177, %178 : vector<32x32xf32>
    %180 = arith.truncf %179 : vector<32x32xf32> to vector<32x32xbf16>
    %cst_49 = arith.constant dense<0.000000e+00> : vector<32x96xf32>
    %181 = tpu.matmul %180, %143, %cst_49 {dimension_numbers = #tpu.dot_dimension_numbers<[1], [0], [0], [1], [0, 0, 1, 1], [], []>} : vector<32x32xbf16>, vector<32x96xbf16>, vector<32x96xf32> -> vector<32x96xf32>
    %182 = vector.broadcast %150 : vector<1x96xf32> to vector<32x96xf32>
    %183 = arith.addf %181, %182 : vector<32x96xf32>
    %184 = vector.shape_cast %183 : vector<32x96xf32> to vector<2x16x96xf32>
    %185 = vector.extract_strided_slice %184 {offsets = [0, 0, 0], sizes = [2, 16, 8], strides = [1, 1, 1]} : vector<2x16x96xf32> to vector<2x16x8xf32>
    %186 = vector.extract_strided_slice %184 {offsets = [0, 0, 8], sizes = [2, 16, 8], strides = [1, 1, 1]} : vector<2x16x96xf32> to vector<2x16x8xf32>
    %187 = vector.extract_strided_slice %184 {offsets = [0, 0, 16], sizes = [2, 16, 8], strides = [1, 1, 1]} : vector<2x16x96xf32> to vector<2x16x8xf32>
    %188 = vector.extract_strided_slice %184 {offsets = [0, 0, 24], sizes = [2, 16, 8], strides = [1, 1, 1]} : vector<2x16x96xf32> to vector<2x16x8xf32>
    %189 = tpu.concatenate %185, %186, %187, %188 in 0 : vector<2x16x8xf32>, vector<2x16x8xf32>, vector<2x16x8xf32>, vector<2x16x8xf32> -> vector<8x16x8xf32>
    %190 = vector.extract_strided_slice %184 {offsets = [0, 0, 32], sizes = [2, 16, 8], strides = [1, 1, 1]} : vector<2x16x96xf32> to vector<2x16x8xf32>
    %191 = vector.extract_strided_slice %184 {offsets = [0, 0, 40], sizes = [2, 16, 8], strides = [1, 1, 1]} : vector<2x16x96xf32> to vector<2x16x8xf32>
    %192 = vector.extract_strided_slice %184 {offsets = [0, 0, 48], sizes = [2, 16, 8], strides = [1, 1, 1]} : vector<2x16x96xf32> to vector<2x16x8xf32>
    %193 = vector.extract_strided_slice %184 {offsets = [0, 0, 56], sizes = [2, 16, 8], strides = [1, 1, 1]} : vector<2x16x96xf32> to vector<2x16x8xf32>
    %194 = tpu.concatenate %190, %191, %192, %193 in 0 : vector<2x16x8xf32>, vector<2x16x8xf32>, vector<2x16x8xf32>, vector<2x16x8xf32> -> vector<8x16x8xf32>
    %195 = vector.extract_strided_slice %184 {offsets = [0, 0, 64], sizes = [2, 16, 8], strides = [1, 1, 1]} : vector<2x16x96xf32> to vector<2x16x8xf32>
    %196 = vector.extract_strided_slice %184 {offsets = [0, 0, 72], sizes = [2, 16, 8], strides = [1, 1, 1]} : vector<2x16x96xf32> to vector<2x16x8xf32>
    %197 = vector.extract_strided_slice %184 {offsets = [0, 0, 80], sizes = [2, 16, 8], strides = [1, 1, 1]} : vector<2x16x96xf32> to vector<2x16x8xf32>
    %198 = vector.extract_strided_slice %184 {offsets = [0, 0, 88], sizes = [2, 16, 8], strides = [1, 1, 1]} : vector<2x16x96xf32> to vector<2x16x8xf32>
    %199 = tpu.concatenate %195, %196, %197, %198 in 0 : vector<2x16x8xf32>, vector<2x16x8xf32>, vector<2x16x8xf32>, vector<2x16x8xf32> -> vector<8x16x8xf32>
    %200 = arith.truncf %189 : vector<8x16x8xf32> to vector<8x16x8xbf16>
    %201 = arith.truncf %194 : vector<8x16x8xf32> to vector<8x16x8xbf16>
    "tpu.trace_start"() <{level = 10 : i32, message = "zqd,zkd->zqk"}> : () -> ()
    %cst_50 = arith.constant dense<0.000000e+00> : vector<8x16x16xf32>
    %202 = tpu.matmul %200, %201, %cst_50 {dimension_numbers = #tpu.dot_dimension_numbers<[2], [2], [1], [1], [0, 0, 0, 1, 1, 1], [0], [0]>} : vector<8x16x8xbf16>, vector<8x16x8xbf16>, vector<8x16x16xf32> -> vector<8x16x16xf32>
    "tpu.trace_stop"() : () -> ()
    %cst_51 = arith.constant dense<0xFF800000> : vector<8x16xf32>
    %203 = vector.multi_reduction <maximumf>, %202, %cst_51 [2] : vector<8x16x16xf32> to vector<8x16xf32>
    %204 = vector.shape_cast %203 : vector<8x16xf32> to vector<8x16x1xf32>
    %205 = vector.broadcast %204 : vector<8x16x1xf32> to vector<8x16x16xf32>
    %206 = arith.subf %202, %205 : vector<8x16x16xf32>
    %207 = math.exp %206 : vector<8x16x16xf32>
    %cst_52 = arith.constant dense<0.000000e+00> : vector<8x16xf32>
    %208 = vector.multi_reduction <add>, %207, %cst_52 [2] : vector<8x16x16xf32> to vector<8x16xf32>
    %209 = vector.shape_cast %208 : vector<8x16xf32> to vector<8x16x1xf32>
    %210 = tpu.reciprocal %209 {approx = true} : vector<8x16x1xf32> -> vector<8x16x1xf32>
    %211 = vector.broadcast %210 : vector<8x16x1xf32> to vector<8x16x16xf32>
    %212 = arith.mulf %207, %211 : vector<8x16x16xf32>
    %213 = arith.truncf %212 : vector<8x16x16xf32> to vector<8x16x16xbf16>
    %214 = arith.truncf %199 : vector<8x16x8xf32> to vector<8x16x8xbf16>
    "tpu.trace_start"() <{level = 10 : i32, message = "zqk,zkd->zqd"}> : () -> ()
    %cst_53 = arith.constant dense<0.000000e+00> : vector<8x16x8xf32>
    %215 = tpu.matmul %213, %214, %cst_53 {dimension_numbers = #tpu.dot_dimension_numbers<[2], [1], [1], [2], [0, 0, 0, 1, 1, 2], [0], [0]>} : vector<8x16x16xbf16>, vector<8x16x8xbf16>, vector<8x16x8xf32> -> vector<8x16x8xf32>
    "tpu.trace_stop"() : () -> ()
    %216 = vector.extract_strided_slice %215 {offsets = [0, 0, 0], sizes = [2, 16, 8], strides = [1, 1, 1]} : vector<8x16x8xf32> to vector<2x16x8xf32>
    %217 = vector.extract_strided_slice %215 {offsets = [2, 0, 0], sizes = [2, 16, 8], strides = [1, 1, 1]} : vector<8x16x8xf32> to vector<2x16x8xf32>
    %218 = vector.extract_strided_slice %215 {offsets = [4, 0, 0], sizes = [2, 16, 8], strides = [1, 1, 1]} : vector<8x16x8xf32> to vector<2x16x8xf32>
    %219 = vector.extract_strided_slice %215 {offsets = [6, 0, 0], sizes = [2, 16, 8], strides = [1, 1, 1]} : vector<8x16x8xf32> to vector<2x16x8xf32>
    %220 = tpu.concatenate %216, %217, %218, %219 in 2 : vector<2x16x8xf32>, vector<2x16x8xf32>, vector<2x16x8xf32>, vector<2x16x8xf32> -> vector<2x16x32xf32>
    %221 = vector.shape_cast %220 : vector<2x16x32xf32> to vector<32x32xf32>
    %222 = arith.truncf %221 : vector<32x32xf32> to vector<32x32xbf16>
    %cst_54 = arith.constant dense<0.000000e+00> : vector<32x32xf32>
    %223 = tpu.matmul %222, %144, %cst_54 {dimension_numbers = #tpu.dot_dimension_numbers<[1], [0], [0], [1], [0, 0, 1, 1], [], []>} : vector<32x32xbf16>, vector<32x32xbf16>, vector<32x32xf32> -> vector<32x32xf32>
    %224 = arith.addf %138, %223 : vector<32x32xf32>
    %225 = vector.broadcast %151 : vector<1x32xf32> to vector<32x32xf32>
    %226 = arith.addf %224, %225 : vector<32x32xf32>
    %cst_55 = arith.constant dense<0.000000e+00> : vector<32xf32>
    %227 = vector.multi_reduction <add>, %226, %cst_55 [1] : vector<32x32xf32> to vector<32xf32>
    %228 = vector.shape_cast %227 : vector<32xf32> to vector<32x1xf32>
    %cst_56 = arith.constant 3.200000e+01 : f32
    %229 = vector.broadcast %cst_56 : f32 to vector<32x1xf32>
    %230 = arith.divf %228, %229 : vector<32x1xf32>
    %231 = vector.broadcast %230 : vector<32x1xf32> to vector<32x32xf32>
    %232 = arith.subf %226, %231 : vector<32x32xf32>
    %233 = vector.broadcast %230 : vector<32x1xf32> to vector<32x32xf32>
    %234 = arith.subf %226, %233 : vector<32x32xf32>
    %235 = arith.mulf %232, %234 : vector<32x32xf32>
    %cst_57 = arith.constant dense<0.000000e+00> : vector<32xf32>
    %236 = vector.multi_reduction <add>, %235, %cst_57 [1] : vector<32x32xf32> to vector<32xf32>
    %237 = vector.shape_cast %236 : vector<32xf32> to vector<32x1xf32>
    %cst_58 = arith.constant 3.200000e+01 : f32
    %238 = vector.broadcast %cst_58 : f32 to vector<32x1xf32>
    %239 = arith.divf %237, %238 : vector<32x1xf32>
    %240 = vector.broadcast %230 : vector<32x1xf32> to vector<32x32xf32>
    %241 = arith.subf %226, %240 : vector<32x32xf32>
    %cst_59 = arith.constant 9.99999997E-7 : f32
    %242 = vector.broadcast %cst_59 : f32 to vector<32x1xf32>
    %243 = arith.addf %239, %242 : vector<32x1xf32>
    %244 = math.rsqrt %243 : vector<32x1xf32>
    %245 = vector.broadcast %244 : vector<32x1xf32> to vector<32x32xf32>
    %246 = arith.mulf %241, %245 : vector<32x32xf32>
    %247 = vector.broadcast %152 : vector<1x32xf32> to vector<32x32xf32>
    %248 = arith.mulf %246, %247 : vector<32x32xf32>
    %249 = vector.broadcast %153 : vector<1x32xf32> to vector<32x32xf32>
    %250 = arith.addf %248, %249 : vector<32x32xf32>
    %251 = arith.truncf %250 : vector<32x32xf32> to vector<32x32xbf16>
    %cst_60 = arith.constant dense<0.000000e+00> : vector<32x64xf32>
    %252 = tpu.matmul %251, %145, %cst_60 {dimension_numbers = #tpu.dot_dimension_numbers<[1], [0], [0], [1], [0, 0, 1, 1], [], []>} : vector<32x32xbf16>, vector<32x64xbf16>, vector<32x64xf32> -> vector<32x64xf32>
    %253 = vector.broadcast %154 : vector<1x64xf32> to vector<32x64xf32>
    %254 = arith.addf %252, %253 : vector<32x64xf32>
    %cst_61 = arith.constant 5.000000e-01 : f32
    %255 = vector.broadcast %cst_61 : f32 to vector<32x64xf32>
    %256 = arith.mulf %255, %254 : vector<32x64xf32>
    %cst_62 = arith.constant 4.471500e-02 : f32
    %257 = vector.broadcast %cst_62 : f32 to vector<32x64xf32>
    %258 = arith.mulf %257, %254 : vector<32x64xf32>
    %259 = arith.mulf %258, %254 : vector<32x64xf32>
    %260 = arith.mulf %259, %254 : vector<32x64xf32>
    %261 = arith.addf %254, %260 : vector<32x64xf32>
    %cst_63 = arith.constant 0.797884583 : f32
    %262 = vector.broadcast %cst_63 : f32 to vector<32x64xf32>
    %263 = arith.mulf %262, %261 : vector<32x64xf32>
    %264 = math.tanh %263 : vector<32x64xf32>
    %cst_64 = arith.constant 1.000000e+00 : f32
    %265 = vector.broadcast %cst_64 : f32 to vector<32x64xf32>
    %266 = arith.addf %265, %264 : vector<32x64xf32>
    %267 = arith.mulf %256, %266 : vector<32x64xf32>
    %268 = arith.truncf %267 : vector<32x64xf32> to vector<32x64xbf16>
    %cst_65 = arith.constant dense<0.000000e+00> : vector<32x32xf32>
    %269 = tpu.matmul %268, %147, %cst_65 {dimension_numbers = #tpu.dot_dimension_numbers<[1], [0], [0], [1], [0, 0, 1, 1], [], []>} : vector<32x64xbf16>, vector<64x32xbf16>, vector<32x32xf32> -> vector<32x32xf32>
    %270 = arith.addf %226, %269 : vector<32x32xf32>
    %271 = vector.broadcast %155 : vector<1x32xf32> to vector<32x32xf32>
    %272 = arith.addf %270, %271 : vector<32x32xf32>
    %c32 = arith.constant 32 : index
    %c0_66 = arith.constant 0 : index
    %273 = vector.load %arg1[%c32, %c0_66] : memref<40x32xf32, #tpu.memory_space<vmem>>, vector<1x32xf32>
    %c33 = arith.constant 33 : index
    %c0_67 = arith.constant 0 : index
    %274 = vector.load %arg1[%c33, %c0_67] : memref<40x32xf32, #tpu.memory_space<vmem>>, vector<1x32xf32>
    %cst_68 = arith.constant dense<0.000000e+00> : vector<32xf32>
    %275 = vector.multi_reduction <add>, %272, %cst_68 [1] : vector<32x32xf32> to vector<32xf32>
    %276 = vector.shape_cast %275 : vector<32xf32> to vector<32x1xf32>
    %cst_69 = arith.constant 3.200000e+01 : f32
    %277 = vector.broadcast %cst_69 : f32 to vector<32x1xf32>
    %278 = arith.divf %276, %277 : vector<32x1xf32>
    %279 = vector.broadcast %278 : vector<32x1xf32> to vector<32x32xf32>
    %280 = arith.subf %272, %279 : vector<32x32xf32>
    %281 = vector.broadcast %278 : vector<32x1xf32> to vector<32x32xf32>
    %282 = arith.subf %272, %281 : vector<32x32xf32>
    %283 = arith.mulf %280, %282 : vector<32x32xf32>
    %cst_70 = arith.constant dense<0.000000e+00> : vector<32xf32>
    %284 = vector.multi_reduction <add>, %283, %cst_70 [1] : vector<32x32xf32> to vector<32xf32>
    %285 = vector.shape_cast %284 : vector<32xf32> to vector<32x1xf32>
    %cst_71 = arith.constant 3.200000e+01 : f32
    %286 = vector.broadcast %cst_71 : f32 to vector<32x1xf32>
    %287 = arith.divf %285, %286 : vector<32x1xf32>
    %288 = vector.broadcast %278 : vector<32x1xf32> to vector<32x32xf32>
    %289 = arith.subf %272, %288 : vector<32x32xf32>
    %cst_72 = arith.constant 9.99999997E-7 : f32
    %290 = vector.broadcast %cst_72 : f32 to vector<32x1xf32>
    %291 = arith.addf %287, %290 : vector<32x1xf32>
    %292 = math.rsqrt %291 : vector<32x1xf32>
    %293 = vector.broadcast %292 : vector<32x1xf32> to vector<32x32xf32>
    %294 = arith.mulf %289, %293 : vector<32x32xf32>
    %295 = vector.broadcast %273 : vector<1x32xf32> to vector<32x32xf32>
    %296 = arith.mulf %294, %295 : vector<32x32xf32>
    %297 = vector.broadcast %274 : vector<1x32xf32> to vector<32x32xf32>
    %298 = arith.addf %296, %297 : vector<32x32xf32>
    %c0_73 = arith.constant 0 : index
    %c0_74 = arith.constant 0 : index
    %299 = vector.load %arg6[%c0_73, %c0_74] : memref<32x32xf32, #tpu.memory_space<vmem>>, vector<32x32xf32>
    tpu.vector_store %arg6[%c0_73, %c0_74], %298 {strides = array<i32>} : memref<32x32xf32, #tpu.memory_space<vmem>>, vector<32x32xf32>,
    return
  }
}

</mosaic_0001>

<bundles_post_ra>
// kernel: transformer_forward.1
= control target key start
LH: loop header
LB: loop body
LE: loop exit
PB: predicated region body
PF: predicated region fallthrough
CT: control target
= control target key end

     0   :  { %vm67_vm0 = vcmask 392192   ;;  %s5194_s0 = inlined_call_operand.vmem [shape: bf16[32,48], index: 0, kind: input, shape index: {}]   ;;  %s5195_s1 = inlined_call_operand.vmem [shape: f32[40,32], index: 1, kind: input, shape index: {}]   ;;  %s5196_s2 = inlined_call_operand.vmem [shape: bf16[48,32], index: 2, kind: input, shape index: {}]   ;;  %s5197_s3 = inlined_call_operand.vmem [shape: bf16[2,32,192], index: 3, kind: input, shape index: {}]   ;;  %s5198_s4 = inlined_call_operand.vmem [shape: bf16[2,64,32], index: 4, kind: input, shape index: {}]   ;;  %s5199_s5 = inlined_call_operand.vmem [shape: f32[2,8,96], index: 5, kind: input, shape index: {}]   ;;  %s5200_s6 = inlined_call_operand.hbm [shape: f32[32,32], index: 6, kind: output, shape index: {}]  }
   0x1   :  { %v3946_v0 = vld [vmem:[%s5196_s2 + $0x10] sm:$0xff]   ;;  %v3947_v1 = vld [vmem:[%s5196_s2 + $0x8] sm:$0xff]   ;;  %v3949_v2 = vld [vmem:[%s5194_s0] sm:$0xff]  }
   0x2   :  { %3539 = vmatprep.subr.bf16.mxu0 %v3946_v0  ;;  %v3948_v3 = vld [vmem:[%s5196_s2] sm:$0xff]   ;;  %3545 = vmatprep.mubr.msk.bf16.mxu0 %vm67_vm0, %v3949_v2  ;;  %v3950_v4 = vld [vmem:[%s5194_s0 + $0x8] sm:$0xff]  }
   0x3   :  { %3540 = vmatpush3.bf16.msra.mxu0 %v3946_v0 }
   0x4   :  { %3541 = vmatprep.subr.bf16.mxu0 %v3947_v1 }
   0x7   :  { %3542 = vmatpush3.bf16.msra.mxu0 %v3947_v1 }
   0x8   :  { %3543 = vmatprep.subr.bf16.mxu0 %v3948_v3 }
   0xb   :  { %3544 = vmatpush3.bf16.msra.mxu0 %v3948_v3 }
   0xc   :  { %11 = vsyncpa [#allocation3], 0  ;;  %v37_v5 = vld [vmem:[%s5195_s1 + $0x10] sm:$0xff]  ;;  %v35_v7 = vld [vmem:[%s5195_s1] sm:$0xff]  ;;  %vm136_vm1 = vcmask 261120   ;;  %v190_v52 = vlaneseq  ;;  %s4180_s19 = smov 120  }
   0xd   :  { %v38_v10 = vld [vmem:[%s5195_s1 + $0x18] sm:$0xff]  ;;  %v36_v14 = vld [vmem:[%s5195_s1 + $0x8] sm:$0xff]  ;;  %v123_v58 = vld [vmem:[%s5199_s5] sm:$0xff]  ;;  %s4181_s20 = smov 112   ;;  %vm4182_vm2 = vmmov 0   ;;  %s4183_s21 = smov 104  }
   0xe   :  { %3546 = vmatmul.mubr.msk.bf16.vlgmr.msra.gmra.mxu0 %vm67_vm0, %v3950_v4  ;;  %v4281_v41 = vld [vmem:[%s5197_s3 + $0x10] ss:$8 sps:$4 sm:$0xff]   ;;  %v4286_v42 = vld [vmem:[%s5197_s3] ss:$8 sps:$4 sm:$0xff]   ;;  %v4292_v56 = vshrl.u32 %v190_v52, 7  ;;  %s4184_s22 = smov 96  }
   0xf   :  { %3549 = vmatprep.subr.bf16.mxu1 %v4281_v41  ;;  %vm330_vm3 = vcmask 64512   ;;  %vm728_vm4 = vcmask 130048   ;;  %s4185_s23 = smov 64   ;;  %s4186_s24 = smov 32   ;;  %vm1345_vm5 = vcmask 195584   ;;  %vm1624_vm6 = vcmask 523264  }
  0x10   :  { %3550 = vmatpush3.bf16.msra.mxu1 %v4281_v41  ;;  %v192_v57 = vsub.s32 0, %v4292_v56  ;;  %v200_v62 = vsub.s32 1, %v4292_v56  ;;  %s4187_s25 = smov 8   ;;  %s4188_s26 = smov 16  }
  0x11   :  { %3551 = vmatprep.subr.bf16.mxu1 %v4286_v42  ;;  %s4189_s27 = smov 24   ;;  %s4190_s12 = smov [#allocation2]  }
  0x12   :  { %v193_v61 = vrot.slane %v123_v58, %v192_v57  ;;  %v201_v3 = vrot.slane %v123_v58, %v200_v62  ;;  %s3337_s13 = sshll.u32 %s4190_s12, 4  ;;  %s3338_s13 = int_to_ptr.vmem [resolvable:$true] %s3337_s13 }
  0x13   :  { %p4162_p1 = scmp.lt.s32.totalorder %s3338_s13, %s3338_s13 }
  0x14   :  { %3552 = vmatpush3.bf16.msra.mxu1 %v4286_v42 }
  0xce   :  { %v3547_v6 = vpop.f32.mrf.mxu0 }
  0xcf   :  { %v4248_v8 = vadd.f32 %v3547_v6, %v37_v5 }
  0xd0   :  { %v108_v9 = vpop.f32.mrf.mxu0 }
  0xd1   :  { %v4253_v11 = vadd.f32 %v108_v9, %v35_v7  ;;  %v143_v12 = vsel %vm136_vm1, %v4248_v8, 0.0 }
  0xd2   :  { %144 = vadd.xlane.f32.xlu1 %v143_v12  ;;  %v3548_v13 = vpop.f32.mrf.mxu0 }
  0xd3   :  { %v4260_v15 = vadd.f32 %v3548_v13, %v38_v10  ;;  %v137_v16 = vsel %vm136_vm1, %v4253_v11, 0.0 }
  0xd4   :  { %v111_v17 = vpop.f32.mrf.mxu0  ;;  %138 = vadd.xlane.f32.xlu0 %v137_v16 }
  0xd5   :  { %v4264_v18 = vadd.f32 %v111_v17, %v36_v14  ;;  %v146_v19 = vsel %vm136_vm1, %v4260_v15, 0.0 }
  0xd6   :  { %147 = vadd.xlane.f32.xlu1 %v146_v19 }
  0xd7   :  { %v140_v20 = vsel %vm136_vm1, %v4264_v18, 0.0 }
  0xd8   :  { %141 = vadd.xlane.f32.xlu0 %v140_v20  ;;  %v210_v20 = vsub.s32 2, %v4292_v56 }
 0x15b   :  { %v145_v21 = vpop.xlane.xlu1 %144 }
 0x15c   :  { %v152_v22 = vmul.f32 0.03125, %v145_v21 }
 0x15d   :  { %v139_v23 = vpop.xlane.xlu0 %138 }
 0x15e   :  { %v150_v24 = vmul.f32 0.03125, %v139_v23  ;;  %v156_v26 = vsub.f32 %v4248_v8, %v152_v22  ;;  %v211_v22 = vrot.slane %v123_v58, %v210_v20 }
 0x15f   :  { %v148_v25 = vpop.xlane.xlu1 %147 }
 0x160   :  { %v154_v27 = vsub.f32 %v4253_v11, %v150_v24  ;;  %v153_v28 = vmul.f32 0.03125, %v148_v25  ;;  %v160_v35 = vmul.f32 %v156_v26, %v156_v26 }
 0x161   :  { %v142_v29 = vpop.xlane.xlu0 %141 }
 0x162   :  { %v151_v30 = vmul.f32 0.03125, %v142_v29  ;;  %v158_v31 = vmul.f32 %v154_v27, %v154_v27  ;;  %v157_v32 = vsub.f32 %v4260_v15, %v153_v28  ;;  %v168_v37 = vsel %vm136_vm1, %v160_v35, 0.0 }
 0x164   :  { %v155_v33 = vsub.f32 %v4264_v18, %v151_v30  ;;  %v162_v34 = vsel %vm136_vm1, %v158_v31, 0.0  ;;  %v161_v39 = vmul.f32 %v157_v32, %v157_v32  ;;  %v4179_v31 = vmov 0.0  }
 0x165   :  { %163 = vadd.xlane.f32.xlu0 %v162_v34  ;;  %3557 = vmatprep.subr.bf16.mxu1 %v4179_v31 }
 0x166   :  { %v159_v36 = vmul.f32 %v155_v33, %v155_v33  ;;  %v171_v40 = vsel %vm136_vm1, %v161_v39, 0.0  ;;  %3575 = vmatprep.subr.bf16.mxu0 %v4179_v31  ;;  %3577 = vmatprep.mubr.msk.bf16.mxu0 %vm4182_vm2, %v4179_v31 }
 0x168   :  { %v165_v38 = vsel %vm136_vm1, %v159_v36, 0.0 }
 0x169   :  { %169 = vadd.xlane.f32.xlu0 %v168_v37  ;;  %166 = vadd.xlane.f32.xlu1 %v165_v38 }
 0x16d   :  { %172 = vadd.xlane.f32.xlu1 %v171_v40 }
 0x1ee   :  { %v164_v43 = vpop.xlane.xlu0 %163 }
 0x1ef   :  { %v174_v44 = vmul.f32 0.03125, %v164_v43 }
 0x1f1   :  { %v178_v45 = vadd.f32 1e-06, %v174_v44 }
 0x1f2   :  { %v167_v46 = vpop.xlane.xlu1 %166  ;;  %v170_v47 = vpop.xlane.xlu0 %169 }
 0x1f3   :  { %3971 = vrsqrt.f32 %v178_v45  ;;  %v175_v48 = vmul.f32 0.03125, %v167_v46  ;;  %v176_v49 = vmul.f32 0.03125, %v170_v47 }
 0x1f5   :  { %v179_v50 = vadd.f32 1e-06, %v175_v48  ;;  %v180_v51 = vadd.f32 1e-06, %v176_v49 }
 0x1f6   :  { %v173_v53 = vpop.xlane.xlu1 %172 }
 0x1f7   :  { %3973 = vrsqrt.f32 %v179_v50  ;;  %v177_v54 = vmul.f32 0.03125, %v173_v53 }
 0x1f8   :  { %3975 = vrsqrt.f32 %v180_v51 }
 0x1f9   :  { %v181_v55 = vadd.f32 1e-06, %v177_v54 }
 0x1fb   :  { %3977 = vrsqrt.f32 %v181_v55 }
 0x200   :  { %v3972_v59 = vpop.eup %3971 }
 0x201   :  { %v186_v60 = vmul.f32 %v3972_v59, %v154_v27 }
 0x203   :  { %v194_v2 = vmul.f32 %v193_v61, %v186_v60 }
 0x204   :  { %v3974_v63 = vpop.eup %3973 }
 0x205   :  { %v3976_v0 = vpop.eup %3975  ;;  %v187_v1 = vmul.f32 %v3974_v63, %v155_v33  ;;  %v202_v7 = vadd.f32 %v201_v3, %v194_v2 }
 0x206   :  { %v188_v4 = vmul.f32 %v3976_v0, %v156_v26 }
 0x207   :  { %v195_v5 = vmul.f32 %v193_v61, %v187_v1 }
 0x208   :  { %v3978_v6 = vpop.eup %3977  ;;  %v196_v12 = vmul.f32 %v193_v61, %v188_v4 }
 0x209   :  { %v203_v9 = vadd.f32 %v201_v3, %v195_v5  ;;  %v189_v10 = vmul.f32 %v3978_v6, %v157_v32 }
 0x20a   :  { %v204_v16 = vadd.f32 %v201_v3, %v196_v12 }
 0x20b   :  { %v206_v13 = vpack.c.bf16 %v203_v9, %v202_v7  ;;  %v197_v14 = vmul.f32 %v193_v61, %v189_v10 }
 0x20d   :  { %3553 = vmatprep.mubr.msk.bf16.mxu1 %vm136_vm1, %v206_v13  ;;  %v205_v17 = vadd.f32 %v201_v3, %v197_v14 }
 0x20f   :  { %v207_v19 = vpack.c.bf16 %v205_v17, %v204_v16 }
 0x211   :  { %3554 = vmatmul.mubr.msk.bf16.vlgmr.msra.gmra.mxu1 %vm136_vm1, %v207_v19 }
 0x212   :  { %3559 = vmatprep.mubr.msk.bf16.mxu1 %vm4182_vm2, %v4179_v31 }
 0x2d1   :  { %v3555_v21 = vpop.f32.mrf.mxu1 }
 0x2d2   :  { %v273_v25 = vadd.f32 %v3555_v21, %v211_v22 }
 0x2d3   :  { %v264_v23 = vpop.f32.mrf.mxu1 }
 0x2d4   :  { %v265_v28 = vadd.f32 %v264_v23, %v211_v22 }
 0x2d5   :  { %v3556_v24 = vpop.f32.mrf.mxu1 }
 0x2d6   :  { %v276_v26 = vadd.f32 %v3556_v24, %v211_v22 }
 0x2d7   :  { %v267_v27 = vpop.f32.mrf.mxu1 }
 0x2d8   :  { %v268_v29 = vadd.f32 %v267_v27, %v211_v22  ;;  %v3831_v30 = vpack.i.bf16 %v276_v26, %v273_v25  ;;  %v4324_v34 = vpack.c.bf16 %v276_v26, %v273_v25 }
 0x2da   :  { %3832 = vrot.lane.b32.xlu1 %v3831_v30, %s4180_s19  ;;  %v3826_v32 = vpack.i.bf16 %v268_v29, %v265_v28  ;;  %v4319_v33 = vpack.c.bf16 %v268_v29, %v265_v28 }
 0x2dc   :  { %3827 = vrot.lane.b32.xlu0 %v3826_v32, %s4180_s19 }
 0x2de   :  { %3837 = vrot.lane.b32.xlu1 %v3826_v32, %s4181_s20 }
 0x2e0   :  { %3847 = vrot.lane.b32.xlu0 %v3826_v32, %s4183_s21 }
 0x2e2   :  { %3842 = vrot.lane.b32.xlu1 %v3831_v30, %s4181_s20 }
 0x2e4   :  { %328 = vrot.lane.b32.xlu0 %v4319_v33, %s4184_s22 }
 0x2e6   :  { %3852 = vrot.lane.b32.xlu1 %v3831_v30, %s4183_s21 }
 0x2ea   :  { %379 = vrot.lane.b32.xlu1 %v4324_v34, %s4184_s22 }
 0x34c   :  { %v3833_v35 = vpop.permute.xlu1 %3832 }
 0x34d   :  { %v3835_v36 = vunpack.i.h.bf16 %v3833_v35  ;;  %v3834_v37 = vunpack.i.l.bf16 %v3833_v35 }
 0x34e   :  { %v3828_v38 = vpop.permute.xlu0 %3827 }
 0x34f   :  { %v3830_v39 = vunpack.i.h.bf16 %v3828_v38  ;;  %v3829_v40 = vunpack.i.l.bf16 %v3828_v38  ;;  %v4328_v43 = vpack.c.bf16 %v3835_v36, %v3834_v37 }
 0x350   :  { %v3838_v44 = vpop.permute.xlu1 %3837 }
 0x351   :  { %v3840_v45 = vunpack.i.h.bf16 %v3838_v44  ;;  %v3839_v46 = vunpack.i.l.bf16 %v3838_v44  ;;  %479 = vrot.lane.b32.xlu1 %v4328_v43, %s4184_s22  ;;  %v4332_v47 = vpack.c.bf16 %v3830_v39, %v3829_v40 }
 0x352   :  { %v3848_v48 = vpop.permute.xlu0 %3847 }
 0x353   :  { %429 = vrot.lane.b32.xlu0 %v4332_v47, %s4184_s22  ;;  %v3850_v49 = vunpack.i.h.bf16 %v3848_v48  ;;  %v3849_v51 = vunpack.i.l.bf16 %v3848_v48  ;;  %v4336_v54 = vpack.c.bf16 %v3840_v45, %v3839_v46 }
 0x354   :  { %v3843_v50 = vpop.permute.xlu1 %3842 }
 0x355   :  { %v3845_v52 = vunpack.i.h.bf16 %v3843_v50  ;;  %v3844_v53 = vunpack.i.l.bf16 %v3843_v50  ;;  %v4345_v0 = vpack.c.bf16 %v3850_v49, %v3849_v51 }
 0x356   :  { %v329_v55 = vpop.permute.xlu0 %328 }
 0x357   :  { %v335_v58 = vsel %vm330_vm3, %v329_v55, 0  ;;  %529 = vrot.lane.b32.xlu0 %v4336_v54, %s4184_s22  ;;  %v4341_v59 = vpack.c.bf16 %v3845_v52, %v3844_v53 }
 0x358   :  { %v3853_v60 = vpop.permute.xlu1 %3852  ;;  %3558 = vmatpush3.bf16.xpose.msra.mxu1 %v335_v58 }
 0x359   :  { %v3855_v61 = vunpack.i.h.bf16 %v3853_v60  ;;  %v3854_v63 = vunpack.i.l.bf16 %v3853_v60  ;;  %579 = vrot.lane.b32.xlu1 %v4341_v59, %s4184_s22  ;;  %3563 = vmatprep.subr.bf16.mxu1 %v4179_v31 }
 0x35b   :  { %629 = vrot.lane.b32.xlu0 %v4345_v0, %s4184_s22  ;;  %v4350_v1 = vpack.c.bf16 %v3855_v61, %v3854_v63 }
 0x35c   :  { %v380_v2 = vpop.permute.xlu1 %379 }
 0x35d   :  { %679 = vrot.lane.b32.xlu1 %v4350_v1, %s4184_s22  ;;  %v385_v3 = vsel %vm330_vm3, %v380_v2, 0 }
 0x35f   :  { %3560 = vmatmul.mubr.msk.bf16.vlgmr.msra.gmra.mxu1 %vm330_vm3, %v4319_v33 }
 0x360   :  { %3564 = vmatpush3.bf16.xpose.msra.mxu1 %v385_v3  ;;  %3565 = vmatprep.mubr.msk.bf16.mxu1 %vm4182_vm2, %v4179_v31 }
 0x361   :  { %3569 = vmatprep.subr.bf16.mxu1 %v4179_v31 }
 0x367   :  { %3566 = vmatmul.mubr.msk.bf16.vlgmr.msra.gmra.mxu1 %vm330_vm3, %v4324_v34 }
 0x368   :  { %3571 = vmatprep.mubr.msk.bf16.mxu1 %vm4182_vm2, %v4179_v31 }
 0x3c3   :  { %v480_v4 = vpop.permute.xlu1 %479 }
 0x3c4   :  { %v485_v5 = vsel %vm330_vm3, %v480_v4, 0 }
 0x3c5   :  { %3576 = vmatpush3.bf16.xpose.msra.mxu0 %v485_v5  ;;  %v430_v6 = vpop.permute.xlu0 %429 }
 0x3c6   :  { %v435_v7 = vsel %vm330_vm3, %v430_v6, 0  ;;  %3587 = vmatprep.subr.bf16.mxu0 %v4179_v31 }
 0x3c7   :  { %3570 = vmatpush3.bf16.xpose.msra.mxu1 %v435_v7 }
 0x3c8   :  { %3581 = vmatprep.subr.bf16.mxu1 %v4179_v31 }
 0x3c9   :  { %v530_v9 = vpop.permute.xlu0 %529 }
 0x3ca   :  { %v535_v13 = vsel %vm330_vm3, %v530_v9, 0 }
 0x3cb   :  { %v580_v10 = vpop.permute.xlu1 %579 }
 0x3cc   :  { %v585_v12 = vsel %vm330_vm3, %v580_v10, 0  ;;  %3578 = vmatmul.mubr.msk.bf16.vlgmr.msra.gmra.mxu0 %vm330_vm3, %v4328_v43 }
 0x3cd   :  { %3588 = vmatpush3.bf16.xpose.msra.mxu0 %v585_v12  ;;  %3589 = vmatprep.mubr.msk.bf16.mxu0 %vm4182_vm2, %v4179_v31  ;;  %v630_v16 = vpop.permute.xlu0 %629 }
 0x3ce   :  { %3572 = vmatmul.mubr.msk.bf16.vlgmr.msra.gmra.mxu1 %vm330_vm3, %v4332_v47  ;;  %3599 = vmatprep.subr.bf16.mxu0 %v4179_v31  ;;  %v635_v19 = vsel %vm330_vm3, %v630_v16, 0 }
 0x3cf   :  { %3582 = vmatpush3.bf16.xpose.msra.mxu1 %v535_v13  ;;  %3583 = vmatprep.mubr.msk.bf16.mxu1 %vm4182_vm2, %v4179_v31  ;;  %v680_v14 = vpop.permute.xlu1 %679 }
 0x3d0   :  { %3593 = vmatprep.subr.bf16.mxu1 %v4179_v31  ;;  %v685_v17 = vsel %vm330_vm3, %v680_v14, 0 }
 0x3d4   :  { %3590 = vmatmul.mubr.msk.bf16.vlgmr.msra.gmra.mxu0 %vm330_vm3, %v4341_v59 }
 0x3d5   :  { %3600 = vmatpush3.bf16.xpose.msra.mxu0 %v685_v17  ;;  %3601 = vmatprep.mubr.msk.bf16.mxu0 %vm4182_vm2, %v4179_v31 }
 0x3d6   :  { %3584 = vmatmul.mubr.msk.bf16.vlgmr.msra.gmra.mxu1 %vm330_vm3, %v4336_v54  ;;  %3611 = vmatprep.subr.bf16.mxu0 %v4179_v31 }
 0x3d7   :  { %3594 = vmatpush3.bf16.xpose.msra.mxu1 %v635_v19  ;;  %3595 = vmatprep.mubr.msk.bf16.mxu1 %vm4182_vm2, %v4179_v31 }
 0x3d8   :  { %3605 = vmatprep.subr.bf16.mxu1 %v4179_v31 }
 0x3dc   :  { %3602 = vmatmul.mubr.msk.bf16.vlgmr.msra.gmra.mxu0 %vm330_vm3, %v4350_v1 }
 0x3dd   :  { %3613 = vmatprep.mubr.msk.bf16.mxu0 %vm4182_vm2, %v4179_v31 }
 0x3de   :  { %3596 = vmatmul.mubr.msk.bf16.vlgmr.msra.gmra.mxu1 %vm330_vm3, %v4345_v0 }
 0x3df   :  { %3607 = vmatprep.mubr.msk.bf16.mxu1 %vm4182_vm2, %v4179_v31 }
 0x41f   :  { %v4400_v21 = vpop.f32.mrf.mxu1 }
 0x420   :  { %v729_v22 = vsel %vm728_vm4, %v4400_v21, -inf }
 0x421   :  { %730 = vmax.xlane.f32.xlu0 %v729_v22  ;;  %v3561_v23 = vpop.f32.mrf.mxu1 }
 0x423   :  { %v4404_v24 = vpop.f32.mrf.mxu1 }
 0x424   :  { %v732_v25 = vsel %vm728_vm4, %v4404_v24, -inf }
 0x425   :  { %733 = vmax.xlane.f32.xlu1 %v732_v25  ;;  %v3562_v26 = vpop.f32.mrf.mxu1 }
 0x427   :  { %v4408_v27 = vpop.f32.mrf.mxu1 }
 0x428   :  { %v735_v28 = vsel %vm728_vm4, %v4408_v27, -inf }
 0x429   :  { %736 = vmax.xlane.f32.xlu0 %v735_v28  ;;  %v3567_v29 = vpop.f32.mrf.mxu1 }
 0x42b   :  { %v4412_v30 = vpop.f32.mrf.mxu1 }
 0x42c   :  { %v738_v32 = vsel %vm728_vm4, %v4412_v30, -inf }
 0x42d   :  { %739 = vmax.xlane.f32.xlu0 %v738_v32  ;;  %v3568_v35 = vpop.f32.mrf.mxu1 }
 0x48c   :  { %v4416_v36 = vpop.f32.mrf.mxu0 }
 0x48d   :  { %v747_v37 = vsel %vm728_vm4, %v4416_v36, -inf }
 0x48e   :  { %v3579_v38 = vpop.f32.mrf.mxu0  ;;  %748 = vmax.xlane.f32.xlu0 %v747_v37  ;;  %v4420_v39 = vpop.f32.mrf.mxu1 }
 0x48f   :  { %v741_v46 = vsel %vm728_vm4, %v4420_v39, -inf }
 0x490   :  { %v3573_v40 = vpop.f32.mrf.mxu1  ;;  %v4422_v44 = vpop.f32.mrf.mxu0 }
 0x491   :  { %v750_v45 = vsel %vm728_vm4, %v4422_v44, -inf }
 0x492   :  { %v3580_v48 = vpop.f32.mrf.mxu0  ;;  %751 = vmax.xlane.f32.xlu1 %v750_v45  ;;  %742 = vmax.xlane.f32.xlu0 %v741_v46  ;;  %v4428_v49 = vpop.f32.mrf.mxu1 }
 0x493   :  { %v744_v53 = vsel %vm728_vm4, %v4428_v49, -inf }
 0x494   :  { %v3574_v50 = vpop.f32.mrf.mxu1  ;;  %v4430_v51 = vpop.f32.mrf.mxu0 }
 0x495   :  { %v759_v52 = vsel %vm728_vm4, %v4430_v51, -inf }
 0x496   :  { %v3591_v55 = vpop.f32.mrf.mxu0  ;;  %760 = vmax.xlane.f32.xlu0 %v759_v52  ;;  %745 = vmax.xlane.f32.xlu1 %v744_v53  ;;  %v4436_v58 = vpop.f32.mrf.mxu1 }
 0x497   :  { %v753_v2 = vsel %vm728_vm4, %v4436_v58, -inf }
 0x498   :  { %v3585_v60 = vpop.f32.mrf.mxu1  ;;  %v4438_v61 = vpop.f32.mrf.mxu0 }
 0x499   :  { %v762_v63 = vsel %vm728_vm4, %v4438_v61, -inf }
 0x49a   :  { %v3592_v3 = vpop.f32.mrf.mxu0  ;;  %763 = vmax.xlane.f32.xlu1 %v762_v63  ;;  %754 = vmax.xlane.f32.xlu0 %v753_v2  ;;  %v4444_v4 = vpop.f32.mrf.mxu1 }
 0x49b   :  { %v756_v9 = vsel %vm728_vm4, %v4444_v4, -inf }
 0x49c   :  { %v3586_v5 = vpop.f32.mrf.mxu1  ;;  %v4446_v6 = vpop.f32.mrf.mxu0 }
 0x49d   :  { %v771_v7 = vsel %vm728_vm4, %v4446_v6, -inf }
 0x49e   :  { %v3603_v10 = vpop.f32.mrf.mxu0  ;;  %772 = vmax.xlane.f32.xlu0 %v771_v7  ;;  %757 = vmax.xlane.f32.xlu1 %v756_v9  ;;  %v4452_v12 = vpop.f32.mrf.mxu1 }
 0x49f   :  { %v765_v16 = vsel %vm728_vm4, %v4452_v12, -inf }
 0x4a0   :  { %v3597_v13 = vpop.f32.mrf.mxu1  ;;  %v4454_v14 = vpop.f32.mrf.mxu0 }
 0x4a2   :  { %v3604_v17 = vpop.f32.mrf.mxu0  ;;  %766 = vmax.xlane.f32.xlu0 %v765_v16  ;;  %v4458_v19 = vpop.f32.mrf.mxu1 }
 0x4a4   :  { %v3598_v22 = vpop.f32.mrf.mxu1 }
 0x4aa   :  { %v731_v23 = vpop.xlane.xlu0 %730 }
 0x4ab   :  { %v777_v25 = vsub.f32 %v4400_v21, %v731_v23 }
 0x4ad   :  { %v793_v28 = vmul.f32 1.442695, %v777_v25 }
 0x4af   :  { %960 = vrot.lane.b32.xlu1 %v4324_v34, %s4185_s23  ;;  %3979 = vpow2.f32 %v793_v28 }
 0x4b2   :  { %v737_v26 = vpop.xlane.xlu0 %736 }
 0x4b3   :  { %1007 = vrot.lane.b32.xlu1 %v4332_v47, %s4185_s23  ;;  %v779_v29 = vsub.f32 %v4408_v27, %v737_v26  ;;  %v734_v27 = vpop.xlane.xlu1 %733 }
 0x4b4   :  { %v778_v35 = vsub.f32 %v4404_v24, %v734_v27 }
 0x4b5   :  { %v797_v34 = vmul.f32 1.442695, %v779_v29 }
 0x4b6   :  { %v740_v37 = vpop.xlane.xlu0 %739  ;;  %v795_v38 = vmul.f32 1.442695, %v778_v35 }
 0x4b7   :  { %1054 = vrot.lane.b32.xlu1 %v4328_v43, %s4185_s23  ;;  %3981 = vpow2.f32 %v797_v34  ;;  %v774_v43 = vsel %vm728_vm4, %v4454_v14, -inf  ;;  %v780_v40 = vsub.f32 %v4412_v30, %v740_v37 }
 0x4b8   :  { %913 = vrot.lane.b32.xlu0 %v4319_v33, %s4185_s23  ;;  %3983 = vpow2.f32 %v795_v38 }
 0x4b9   :  { %v799_v45 = vmul.f32 1.442695, %v780_v40 }
 0x4bb   :  { %3985 = vpow2.f32 %v799_v45 }
 0x4bc   :  { %1101 = vrot.lane.b32.xlu0 %v4336_v54, %s4185_s23  ;;  %v4472_v47 = vpop.eup %3979  ;;  %v768_v54 = vsel %vm728_vm4, %v4458_v19, -inf }
 0x4bd   :  { %v825_v33 = vsel %vm728_vm4, %v4472_v47, 0.0 }
 0x4c4   :  { %v4478_v32 = vpop.eup %3981 }
 0x4c5   :  { %v831_v21 = vsel %vm728_vm4, %v4478_v32, 0.0  ;;  %v4488_v46 = vpop.eup %3983 }
 0x4c6   :  { %v828_v48 = vsel %vm728_vm4, %v4488_v46, 0.0 }
 0x4c8   :  { %v4492_v50 = vpop.eup %3985 }
 0x4db   :  { %775 = vmax.xlane.f32.xlu1 %v774_v43  ;;  %826 = vadd.xlane.f32.xlu0 %v825_v33 }
 0x4df   :  { %769 = vmax.xlane.f32.xlu1 %v768_v54  ;;  %832 = vadd.xlane.f32.xlu0 %v831_v21 }
 0x4f0   :  { %1148 = vrot.lane.b32.xlu1 %v4341_v59, %s4185_s23  ;;  %v834_v59 = vsel %vm728_vm4, %v4492_v50, 0.0 }
 0x514   :  { %829 = vadd.xlane.f32.xlu1 %v828_v48 }
 0x517   :  { %v749_v52 = vpop.xlane.xlu0 %748 }
 0x518   :  { %v783_v24 = vsub.f32 %v4416_v36, %v749_v52  ;;  %835 = vadd.xlane.f32.xlu1 %v834_v59 }
 0x51a   :  { %v805_v53 = vmul.f32 1.442695, %v783_v24 }
 0x51b   :  { %v752_v30 = vpop.xlane.xlu1 %751  ;;  %v743_v55 = vpop.xlane.xlu0 %742 }
 0x51c   :  { %3987 = vpow2.f32 %v805_v53  ;;  %v784_v60 = vsub.f32 %v4422_v44, %v752_v30  ;;  %v781_v63 = vsub.f32 %v4420_v39, %v743_v55 }
 0x51e   :  { %v807_v2 = vmul.f32 1.442695, %v784_v60  ;;  %v801_v3 = vmul.f32 1.442695, %v781_v63 }
 0x51f   :  { %v746_v5 = vpop.xlane.xlu1 %745  ;;  %v761_v7 = vpop.xlane.xlu0 %760 }
 0x520   :  { %3989 = vpow2.f32 %v807_v2  ;;  %v782_v9 = vsub.f32 %v4428_v49, %v746_v5  ;;  %v787_v10 = vsub.f32 %v4430_v51, %v761_v7 }
 0x521   :  { %3991 = vpow2.f32 %v801_v3 }
 0x522   :  { %v803_v36 = vmul.f32 1.442695, %v782_v9  ;;  %v813_v13 = vmul.f32 1.442695, %v787_v10 }
 0x523   :  { %v764_v16 = vpop.xlane.xlu1 %763  ;;  %v755_v17 = vpop.xlane.xlu0 %754 }
 0x524   :  { %3993 = vpow2.f32 %v803_v36  ;;  %v788_v22 = vsub.f32 %v4438_v61, %v764_v16  ;;  %v785_v44 = vsub.f32 %v4436_v58, %v755_v17 }
 0x525   :  { %3995 = vpow2.f32 %v813_v13 }
 0x526   :  { %v815_v39 = vmul.f32 1.442695, %v788_v22  ;;  %v809_v23 = vmul.f32 1.442695, %v785_v44 }
 0x527   :  { %v758_v25 = vpop.xlane.xlu1 %757  ;;  %v773_v26 = vpop.xlane.xlu0 %772 }
 0x528   :  { %3997 = vpow2.f32 %v815_v39  ;;  %v786_v49 = vsub.f32 %v4444_v4, %v758_v25  ;;  %v791_v51 = vsub.f32 %v4446_v6, %v773_v26 }
 0x529   :  { %v4505_v28 = vpop.eup %3987  ;;  %3999 = vpow2.f32 %v809_v23 }
 0x52a   :  { %v811_v29 = vmul.f32 1.442695, %v786_v49  ;;  %v821_v34 = vmul.f32 1.442695, %v791_v51  ;;  %v843_v61 = vsel %vm728_vm4, %v4505_v28, 0.0 }
 0x52b   :  { %v961_v43 = vpop.permute.xlu1 %960  ;;  %844 = vadd.xlane.f32.xlu0 %v843_v61  ;;  %v767_v58 = vpop.xlane.xlu0 %766 }
 0x52c   :  { %4001 = vpow2.f32 %v811_v29  ;;  %v789_v33 = vsub.f32 %v4452_v12, %v767_v58  ;;  %3612 = vmatpush3.bf16.msra.mxu0 %v961_v43 }
 0x52d   :  { %v4510_v54 = vpop.eup %3989  ;;  %4003 = vpow2.f32 %v821_v34  ;;  %3623 = vmatprep.subr.bf16.mxu0 %v4179_v31 }
 0x52e   :  { %v4513_v4 = vpop.eup %3991  ;;  %v817_v6 = vmul.f32 1.442695, %v789_v33  ;;  %v846_v21 = vsel %vm728_vm4, %v4510_v54, 0.0 }
 0x52f   :  { %847 = vadd.xlane.f32.xlu1 %v846_v21  ;;  %v837_v27 = vsel %vm728_vm4, %v4513_v4, 0.0  ;;  %v914_v35 = vpop.permute.xlu0 %913  ;;  %v1008_v2 = vpop.permute.xlu1 %1007 }
 0x530   :  { %4005 = vpow2.f32 %v817_v6  ;;  %838 = vadd.xlane.f32.xlu0 %v837_v27  ;;  %3606 = vmatpush3.bf16.msra.mxu1 %v914_v35 }
 0x531   :  { %v4519_v12 = vpop.eup %3993  ;;  %3617 = vmatprep.subr.bf16.mxu1 %v4179_v31 }
 0x532   :  { %v4522_v37 = vpop.eup %3995  ;;  %v840_v38 = vsel %vm728_vm4, %v4519_v12, 0.0 }
 0x533   :  { %841 = vadd.xlane.f32.xlu1 %v840_v38  ;;  %v855_v40 = vsel %vm728_vm4, %v4522_v37, 0.0  ;;  %v1055_v3 = vpop.permute.xlu1 %1054 }
 0x534   :  { %856 = vadd.xlane.f32.xlu0 %v855_v40 }
 0x535   :  { %v4528_v45 = vpop.eup %3997 }
 0x536   :  { %v4530_v48 = vpop.eup %3999  ;;  %v858_v52 = vsel %vm728_vm4, %v4528_v45, 0.0 }
 0x537   :  { %859 = vadd.xlane.f32.xlu1 %v858_v52  ;;  %v849_v59 = vsel %vm728_vm4, %v4530_v48, 0.0 }
 0x538   :  { %850 = vadd.xlane.f32.xlu0 %v849_v59 }
 0x539   :  { %v4536_v24 = vpop.eup %4001 }
 0x53a   :  { %v4538_v53 = vpop.eup %4003  ;;  %v852_v30 = vsel %vm728_vm4, %v4536_v24, 0.0 }
 0x53b   :  { %853 = vadd.xlane.f32.xlu1 %v852_v30  ;;  %v867_v55 = vsel %vm728_vm4, %v4538_v53, 0.0 }
 0x53c   :  { %868 = vadd.xlane.f32.xlu0 %v867_v55 }
 0x53d   :  { %v4544_v60 = vpop.eup %4005 }
 0x53e   :  { %v861_v63 = vsel %vm728_vm4, %v4544_v60, 0.0 }
 0x540   :  { %862 = vadd.xlane.f32.xlu0 %v861_v63 }
 0x556   :  { %1195 = vrot.lane.b32.xlu0 %v4345_v0, %s4185_s23 }
 0x55a   :  { %1354 = vrot.lane.b32.xlu0 %v4281_v41, %s4186_s24 }
 0x564   :  { %v776_v5 = vpop.xlane.xlu1 %775 }
 0x565   :  { %v792_v7 = vsub.f32 %v4454_v14, %v776_v5  ;;  %v4562_v14 = vpop.permute.xlu0 %1101 }
 0x567   :  { %v823_v9 = vmul.f32 1.442695, %v792_v7 }
 0x568   :  { %v770_v10 = vpop.xlane.xlu1 %769 }
 0x569   :  { %4007 = vpow2.f32 %v823_v9  ;;  %v790_v36 = vsub.f32 %v4458_v19, %v770_v10  ;;  %v827_v19 = vpop.xlane.xlu0 %826 }
 0x56b   :  { %v819_v13 = vmul.f32 1.442695, %v790_v36 }
 0x56c   :  { %v1149_v44 = vpop.permute.xlu1 %1148 }
 0x56d   :  { %4009 = vpow2.f32 %v819_v13  ;;  %v833_v39 = vpop.xlane.xlu0 %832 }
 0x56e   :  { %4011 = vrcp.f32 %v827_v19 }
 0x576   :  { %v4552_v16 = vpop.eup %4007 }
 0x577   :  { %v870_v17 = vsel %vm728_vm4, %v4552_v16, 0.0 }
 0x578   :  { %871 = vadd.xlane.f32.xlu1 %v870_v17 }
 0x57a   :  { %v4556_v22 = vpop.eup %4009 }
 0x57b   :  { %v864_v0 = vsel %vm728_vm4, %v4556_v22, 0.0  ;;  %v4012_v26 = vpop.eup %4011 }
 0x57c   :  { %865 = vadd.xlane.f32.xlu1 %v864_v0  ;;  %v889_v51 = vmul.f32 %v4012_v26, %v4472_v47 }
 0x58d   :  { %1242 = vrot.lane.b32.xlu1 %v4350_v1, %s4185_s23 }
 0x59d   :  { %v830_v23 = vpop.xlane.xlu1 %829 }
 0x59e   :  { %4013 = vrcp.f32 %v830_v23 }
 0x59f   :  { %4015 = vrcp.f32 %v833_v39 }
 0x5a1   :  { %v836_v25 = vpop.xlane.xlu1 %835 }
 0x5a2   :  { %4017 = vrcp.f32 %v836_v25 }
 0x5ab   :  { %v4014_v49 = vpop.eup %4013 }
 0x5ac   :  { %v890_v29 = vmul.f32 %v4014_v49, %v4488_v46  ;;  %v4016_v34 = vpop.eup %4015 }
 0x5ad   :  { %v891_v43 = vmul.f32 %v4016_v34, %v4478_v32 }
 0x5ae   :  { %v905_v61 = vpack.c.bf16 %v890_v29, %v889_v51 }
 0x5af   :  { %v4018_v1 = vpop.eup %4017 }
 0x5b0   :  { %3608 = vmatmul.mubr.msk.bf16.vlgmr.msra.gmra.mxu1 %vm728_vm4, %v905_v61  ;;  %v892_v58 = vmul.f32 %v4018_v1, %v4492_v50 }
 0x5b1   :  { %3618 = vmatpush3.bf16.msra.mxu1 %v1008_v2  ;;  %3619 = vmatprep.mubr.msk.bf16.mxu1 %vm4182_vm2, %v4179_v31 }
 0x5b2   :  { %v906_v33 = vpack.c.bf16 %v892_v58, %v891_v43  ;;  %3629 = vmatprep.subr.bf16.mxu1 %v4179_v31 }
 0x5b4   :  { %3614 = vmatmul.mubr.msk.bf16.vlgmr.msra.gmra.mxu0 %vm728_vm4, %v906_v33  ;;  %v845_v47 = vpop.xlane.xlu0 %844 }
 0x5b5   :  { %3624 = vmatpush3.bf16.msra.mxu0 %v1055_v3  ;;  %3625 = vmatprep.mubr.msk.bf16.mxu0 %vm4182_vm2, %v4179_v31  ;;  %4019 = vrcp.f32 %v845_v47 }
 0x5b6   :  { %3635 = vmatprep.subr.bf16.mxu0 %v4179_v31 }
 0x5b8   :  { %v848_v32 = vpop.xlane.xlu1 %847 }
 0x5b9   :  { %4021 = vrcp.f32 %v848_v32  ;;  %v839_v46 = vpop.xlane.xlu0 %838 }
 0x5ba   :  { %4023 = vrcp.f32 %v839_v46 }
 0x5bc   :  { %v842_v50 = vpop.xlane.xlu1 %841 }
 0x5bd   :  { %4025 = vrcp.f32 %v842_v50  ;;  %v857_v6 = vpop.xlane.xlu0 %856 }
 0x5be   :  { %4027 = vrcp.f32 %v857_v6 }
 0x5c0   :  { %v860_v21 = vpop.xlane.xlu1 %859 }
 0x5c1   :  { %4029 = vrcp.f32 %v860_v21  ;;  %v851_v27 = vpop.xlane.xlu0 %850 }
 0x5c2   :  { %4031 = vrcp.f32 %v851_v27  ;;  %v4020_v35 = vpop.eup %4019 }
 0x5c3   :  { %v895_v52 = vmul.f32 %v4020_v35, %v4505_v28 }
 0x5c4   :  { %v854_v38 = vpop.xlane.xlu1 %853 }
 0x5c5   :  { %4033 = vrcp.f32 %v854_v38  ;;  %v869_v2 = vpop.xlane.xlu0 %868 }
 0x5c6   :  { %v4022_v40 = vpop.eup %4021  ;;  %4035 = vrcp.f32 %v869_v2 }
 0x5c7   :  { %v896_v59 = vmul.f32 %v4022_v40, %v4510_v54  ;;  %v4024_v30 = vpop.eup %4023 }
 0x5c8   :  { %v893_v3 = vmul.f32 %v4024_v30, %v4513_v4 }
 0x5c9   :  { %v908_v55 = vpack.c.bf16 %v896_v59, %v895_v52  ;;  %v863_v4 = vpop.xlane.xlu0 %862 }
 0x5ca   :  { %v4026_v63 = vpop.eup %4025 }
 0x5cb   :  { %3626 = vmatmul.mubr.msk.bf16.vlgmr.msra.gmra.mxu0 %vm728_vm4, %v908_v55  ;;  %v894_v5 = vmul.f32 %v4026_v63, %v4519_v12  ;;  %v4028_v7 = vpop.eup %4027 }
 0x5cc   :  { %3636 = vmatpush3.bf16.msra.mxu0 %v1149_v44  ;;  %3637 = vmatprep.mubr.msk.bf16.mxu0 %vm4182_vm2, %v4179_v31  ;;  %v899_v54 = vmul.f32 %v4028_v7, %v4522_v37 }
 0x5cd   :  { %v907_v9 = vpack.c.bf16 %v894_v5, %v893_v3  ;;  %3647 = vmatprep.subr.bf16.mxu0 %v4179_v31 }
 0x5ce   :  { %v4030_v28 = vpop.eup %4029 }
 0x5cf   :  { %3620 = vmatmul.mubr.msk.bf16.vlgmr.msra.gmra.mxu1 %vm728_vm4, %v907_v9  ;;  %v900_v10 = vmul.f32 %v4030_v28, %v4528_v45  ;;  %v4032_v36 = vpop.eup %4031  ;;  %v1196_v45 = vpop.permute.xlu0 %1195 }
 0x5d0   :  { %3630 = vmatpush3.bf16.msra.mxu1 %v4562_v14  ;;  %3631 = vmatprep.mubr.msk.bf16.mxu1 %vm4182_vm2, %v4179_v31  ;;  %v897_v17 = vmul.f32 %v4032_v36, %v4530_v48 }
 0x5d1   :  { %v910_v12 = vpack.c.bf16 %v900_v10, %v899_v54  ;;  %3641 = vmatprep.subr.bf16.mxu1 %v4179_v31 }
 0x5d2   :  { %v4034_v13 = vpop.eup %4033 }
 0x5d3   :  { %3638 = vmatmul.mubr.msk.bf16.vlgmr.msra.gmra.mxu0 %vm728_vm4, %v910_v12  ;;  %v898_v0 = vmul.f32 %v4034_v13, %v4536_v24  ;;  %v4036_v24 = vpop.eup %4035  ;;  %v1355_v47 = vpop.permute.xlu0 %1354 }
 0x5d4   :  { %3649 = vmatprep.mubr.msk.bf16.mxu0 %vm4182_vm2, %v4179_v31  ;;  %v903_v39 = vmul.f32 %v4036_v24, %v4538_v53 }
 0x5d5   :  { %v909_v37 = vpack.c.bf16 %v898_v0, %v897_v17 }
 0x5d7   :  { %3632 = vmatmul.mubr.msk.bf16.vlgmr.msra.gmra.mxu1 %vm728_vm4, %v909_v37 }
 0x5d8   :  { %3642 = vmatpush3.bf16.msra.mxu1 %v1196_v45  ;;  %3643 = vmatprep.mubr.msk.bf16.mxu1 %vm4182_vm2, %v4179_v31 }
 0x5d9   :  { %3653 = vmatprep.subr.bf16.mxu1 %v1355_v47 }
 0x601   :  { %v872_v14 = vpop.xlane.xlu1 %871 }
 0x602   :  { %4037 = vrcp.f32 %v872_v14 }
 0x603   :  { %4039 = vrcp.f32 %v863_v4 }
 0x605   :  { %v866_v19 = vpop.xlane.xlu1 %865 }
 0x606   :  { %4041 = vrcp.f32 %v866_v19 }
 0x609   :  { %v1243_v48 = vpop.permute.xlu1 %1242 }
 0x60a   :  { %3648 = vmatpush3.bf16.msra.mxu0 %v1243_v48 }
 0x60f   :  { %v4038_v44 = vpop.eup %4037 }
 0x610   :  { %v904_v23 = vmul.f32 %v4038_v44, %v4552_v16  ;;  %v4040_v25 = vpop.eup %4039 }
 0x611   :  { %v901_v51 = vmul.f32 %v4040_v25, %v4544_v60 }
 0x612   :  { %v912_v26 = vpack.c.bf16 %v904_v23, %v903_v39 }
 0x613   :  { %v4042_v49 = vpop.eup %4041 }
 0x614   :  { %3650 = vmatmul.mubr.msk.bf16.vlgmr.msra.gmra.mxu0 %vm728_vm4, %v912_v26  ;;  %v902_v29 = vmul.f32 %v4042_v49, %v4556_v22 }
 0x616   :  { %v911_v34 = vpack.c.bf16 %v902_v29, %v901_v51 }
 0x618   :  { %3644 = vmatmul.mubr.msk.bf16.vlgmr.msra.gmra.mxu1 %vm728_vm4, %v911_v34 }
 0x619   :  { %3654 = vmatpush3.bf16.msra.mxu1 %v1355_v47 }
 0x670   :  { %v4607_v61 = vpop.f32.mrf.mxu1 }
 0x672   :  { %v3609_v41 = vpop.f32.mrf.mxu1 }
 0x674   :  { %v4609_v1 = vpop.f32.mrf.mxu1  ;;  %v4611_v53 = vpop.f32.mrf.mxu0 }
 0x676   :  { %v3610_v16 = vpop.f32.mrf.mxu1  ;;  %v3615_v43 = vpop.f32.mrf.mxu0 }
 0x678   :  { %v4613_v58 = vpop.f32.mrf.mxu0 }
 0x67a   :  { %v3616_v33 = vpop.f32.mrf.mxu0 }
 0x68b   :  { %v1094_v60 = vpop.f32.mrf.mxu0 }
 0x68d   :  { %v3627_v22 = vpop.f32.mrf.mxu0 }
 0x68f   :  { %v1047_v32 = vpop.f32.mrf.mxu1  ;;  %v1097_v46 = vpop.f32.mrf.mxu0 }
 0x690   :  { %v3856_v50 = vpack.i.bf16 %v1097_v46, %v1094_v60 }
 0x691   :  { %v3621_v6 = vpop.f32.mrf.mxu1  ;;  %v3628_v21 = vpop.f32.mrf.mxu0 }
 0x692   :  { %3857 = vrot.lane.b32.xlu0 %v3856_v50, %s4187_s25 }
 0x693   :  { %v1050_v27 = vpop.f32.mrf.mxu1  ;;  %v1188_v35 = vpop.f32.mrf.mxu0 }
 0x694   :  { %v3861_v38 = vpack.i.bf16 %v1050_v27, %v1047_v32 }
 0x695   :  { %v3622_v40 = vpop.f32.mrf.mxu1  ;;  %v3639_v52 = vpop.f32.mrf.mxu0 }
 0x696   :  { %3862 = vrot.lane.b32.xlu1 %v3861_v38, %s4187_s25 }
 0x697   :  { %v1141_v59 = vpop.f32.mrf.mxu1  ;;  %v1191_v30 = vpop.f32.mrf.mxu0 }
 0x698   :  { %v3866_v55 = vpack.i.bf16 %v1191_v30, %v1188_v35 }
 0x699   :  { %v3633_v63 = vpop.f32.mrf.mxu1  ;;  %v3640_v2 = vpop.f32.mrf.mxu0 }
 0x69a   :  { %3867 = vrot.lane.b32.xlu0 %v3866_v55, %s4188_s26 }
 0x69b   :  { %v1144_v3 = vpop.f32.mrf.mxu1 }
 0x69c   :  { %v3871_v5 = vpack.i.bf16 %v1144_v3, %v1141_v59  ;;  %v4646_v59 = vld [vmem:[%s5199_s5] sm:$0xff] }
 0x69d   :  { %v3634_v7 = vpop.f32.mrf.mxu1 }
 0x69e   :  { %3872 = vrot.lane.b32.xlu1 %v3871_v5, %s4188_s26  ;;  %1352 = vrot.lane.b32.xlu0 %v4286_v42, %s4186_s24 }
 0x6d4   :  { %v1282_v9 = vpop.f32.mrf.mxu0 }
 0x6d6   :  { %v3651_v28 = vpop.f32.mrf.mxu0 }
 0x6d8   :  { %v1235_v54 = vpop.f32.mrf.mxu1  ;;  %v1285_v10 = vpop.f32.mrf.mxu0 }
 0x6d9   :  { %v3881_v0 = vpack.i.bf16 %v1285_v10, %v1282_v9 }
 0x6da   :  { %v3645_v36 = vpop.f32.mrf.mxu1  ;;  %v3652_v4 = vpop.f32.mrf.mxu0 }
 0x6dc   :  { %v1238_v12 = vpop.f32.mrf.mxu1 }
 0x6dd   :  { %v3876_v13 = vpack.i.bf16 %v1238_v12, %v1235_v54 }
 0x6de   :  { %v3646_v17 = vpop.f32.mrf.mxu1 }
 0x6df   :  { %3877 = vrot.lane.b32.xlu1 %v3876_v13, %s4189_s27 }
 0x6e3   :  { %3882 = vrot.lane.b32.xlu1 %v3881_v0, %s4189_s27 }
 0x704   :  { %v3858_v37 = vpop.permute.xlu0 %3857 }
 0x705   :  { %v3860_v23 = vunpack.i.h.bf16 %v3858_v37  ;;  %v3859_v25 = vunpack.i.l.bf16 %v3858_v37 }
 0x708   :  { %v3863_v42 = vpop.permute.xlu1 %3862 }
 0x709   :  { %v3865_v48 = vunpack.i.h.bf16 %v3863_v42  ;;  %v3864_v24 = vunpack.i.l.bf16 %v3863_v42 }
 0x70b   :  { %v1338_v49 = vsel %vm330_vm3, %v4609_v1, %v3865_v48  ;;  %v1337_v51 = vsel %vm330_vm3, %v4607_v61, %v3864_v24  ;;  %v1340_v1 = vsel %vm330_vm3, %v4613_v58, %v3860_v23  ;;  %v1339_v61 = vsel %vm330_vm3, %v4611_v53, %v3859_v25 }
 0x70c   :  { %v3868_v45 = vpop.permute.xlu0 %3867  ;;  %v1419_v58 = vsub.s32 3, %v4292_v56 }
 0x70d   :  { %v3870_v41 = vunpack.i.h.bf16 %v3868_v45  ;;  %v3869_v16 = vunpack.i.l.bf16 %v3868_v45 }
 0x70e   :  { %v1420_v30 = vrot.slane %v4646_v59, %v1419_v58 }
 0x70f   :  { %v1343_v6 = vsel %vm728_vm4, %v1339_v61, %v3869_v16  ;;  %v1344_v21 = vsel %vm728_vm4, %v1340_v1, %v3870_v41 }
 0x710   :  { %v1353_v14 = vpop.permute.xlu0 %1352  ;;  %v3873_v19 = vpop.permute.xlu1 %3872 }
 0x711   :  { %3655 = vmatprep.subr.bf16.mxu1 %v1353_v14  ;;  %v3875_v44 = vunpack.i.h.bf16 %v3873_v19  ;;  %v3874_v39 = vunpack.i.l.bf16 %v3873_v19 }
 0x712   :  { %3656 = vmatpush3.bf16.msra.mxu1 %v1353_v14 }
 0x713   :  { %v1342_v43 = vsel %vm728_vm4, %v1338_v49, %v3875_v44  ;;  %v1341_v33 = vsel %vm728_vm4, %v1337_v51, %v3874_v39  ;;  %v3955_v51 = vld [vmem:[%s5197_s3 + $0x14] ss:$8 sps:$4 sm:$0xff]  }
 0x714   :  { %3661 = vmatprep.subr.bf16.mxu0 %v3955_v51 }
 0x715   :  { %3662 = vmatpush3.bf16.msra.mxu0 %v3955_v51 }
 0x751   :  { %v3878_v26 = vpop.permute.xlu1 %3877 }
 0x752   :  { %v3880_v29 = vunpack.i.h.bf16 %v3878_v26  ;;  %v3879_v34 = vunpack.i.l.bf16 %v3878_v26 }
 0x754   :  { %v1347_v47 = vsel %vm1345_vm5, %v1342_v43, %v3880_v29  ;;  %v1346_v60 = vsel %vm1345_vm5, %v1341_v33, %v3879_v34  ;;  %v3956_v29 = vld [vmem:[%s5197_s3 + $0x4] ss:$8 sps:$4 sm:$0xff]  }
 0x755   :  { %v1350_v22 = vpack.c.bf16 %v1347_v47, %v1346_v60  ;;  %v3883_v32 = vpop.permute.xlu1 %3882  ;;  %3663 = vmatprep.subr.bf16.mxu0 %v3956_v29 }
 0x756   :  { %v3885_v46 = vunpack.i.h.bf16 %v3883_v32  ;;  %v3884_v50 = vunpack.i.l.bf16 %v3883_v32  ;;  %3664 = vmatpush3.bf16.msra.mxu0 %v3956_v29 }
 0x757   :  { %3657 = vmatprep.mubr.msk.bf16.mxu1 %vm136_vm1, %v1350_v22 }
 0x758   :  { %v1348_v27 = vsel %vm1345_vm5, %v1343_v6, %v3884_v50  ;;  %v1349_v35 = vsel %vm1345_vm5, %v1344_v21, %v3885_v46  ;;  %v1479_v50 = vsub.s32 4, %v4292_v56 }
 0x759   :  { %v1351_v38 = vpack.c.bf16 %v1349_v35, %v1348_v27  ;;  %v1487_v35 = vsub.s32 5, %v4292_v56 }
 0x75a   :  { %v1480_v27 = vrot.slane %v4646_v59, %v1479_v50 }
 0x75b   :  { %3658 = vmatmul.mubr.msk.bf16.vlgmr.msra.gmra.mxu1 %vm136_vm1, %v1351_v38 }
 0x81b   :  { %v3659_v40 = vpop.f32.mrf.mxu1 }
 0x81c   :  { %v1415_v53 = vadd.f32 %v3659_v40, %v4248_v8 }
 0x81d   :  { %v1398_v52 = vpop.f32.mrf.mxu1 }
 0x81e   :  { %v1413_v55 = vadd.f32 %v1398_v52, %v4253_v11  ;;  %v4654_v5 = vadd.f32 %v1420_v30, %v1415_v53 }
 0x81f   :  { %v3660_v63 = vpop.f32.mrf.mxu1 }
 0x820   :  { %v4652_v2 = vadd.f32 %v1420_v30, %v1413_v55  ;;  %v1416_v7 = vadd.f32 %v3660_v63, %v4260_v15  ;;  %v1431_v11 = vsel %vm136_vm1, %v4654_v5, 0.0  ;;  %v1488_v55 = vrot.slane %v4646_v59, %v1487_v35 }
 0x821   :  { %v1401_v3 = vpop.f32.mrf.mxu1 }
 0x822   :  { %v1414_v8 = vadd.f32 %v1401_v3, %v4264_v18  ;;  %v1425_v9 = vsel %vm136_vm1, %v4652_v2, 0.0  ;;  %v4662_v54 = vadd.f32 %v1420_v30, %v1416_v7 }
 0x823   :  { %1426 = vadd.xlane.f32.xlu0 %v1425_v9 }
 0x824   :  { %v4660_v28 = vadd.f32 %v1420_v30, %v1414_v8  ;;  %v1434_v15 = vsel %vm136_vm1, %v4662_v54, 0.0 }
 0x826   :  { %v1428_v10 = vsel %vm136_vm1, %v4660_v28, 0.0 }
 0x827   :  { %1432 = vadd.xlane.f32.xlu0 %v1431_v11  ;;  %1429 = vadd.xlane.f32.xlu1 %v1428_v10 }
 0x82b   :  { %1435 = vadd.xlane.f32.xlu0 %v1434_v15 }
 0x8ac   :  { %v1427_v18 = vpop.xlane.xlu0 %1426 }
 0x8ad   :  { %v1437_v36 = vmul.f32 0.03125, %v1427_v18 }
 0x8af   :  { %v1441_v4 = vsub.f32 %v4652_v2, %v1437_v36 }
 0x8b0   :  { %v1433_v12 = vpop.xlane.xlu0 %1432  ;;  %v1430_v13 = vpop.xlane.xlu1 %1429 }
 0x8b1   :  { %v1439_v17 = vmul.f32 0.03125, %v1433_v12  ;;  %v1438_v0 = vmul.f32 0.03125, %v1430_v13  ;;  %v1445_v37 = vmul.f32 %v1441_v4, %v1441_v4  ;;  %v3957_v12 = vld [vmem:[%s5198_s4 + $0x18] sm:$0xff]   ;;  %v3958_v13 = vld [vmem:[%s5198_s4 + $0x10] sm:$0xff]  }
 0x8b2   :  { %3669 = vmatprep.subr.bf16.mxu1 %v3957_v12 }
 0x8b3   :  { %v1443_v45 = vsub.f32 %v4654_v5, %v1439_v17  ;;  %v1442_v14 = vsub.f32 %v4660_v28, %v1438_v0  ;;  %v1449_v42 = vsel %vm136_vm1, %v1445_v37, 0.0  ;;  %3670 = vmatpush3.bf16.msra.mxu1 %v3957_v12  ;;  %v3959_v17 = vld [vmem:[%s5198_s4 + $0x8] sm:$0xff]   ;;  %v3960_v0 = vld [vmem:[%s5198_s4] sm:$0xff]   ;;  %v1497_v37 = vsub.s32 6, %v4292_v56 }
 0x8b4   :  { %1450 = vadd.xlane.f32.xlu0 %v1449_v42  ;;  %v1436_v19 = vpop.xlane.xlu0 %1435  ;;  %3671 = vmatprep.subr.bf16.mxu1 %v3958_v13 }
 0x8b5   :  { %v1440_v48 = vmul.f32 0.03125, %v1436_v19  ;;  %v1447_v24 = vmul.f32 %v1443_v45, %v1443_v45  ;;  %v1446_v44 = vmul.f32 %v1442_v14, %v1442_v14 }
 0x8b7   :  { %v1444_v39 = vsub.f32 %v4662_v54, %v1440_v48  ;;  %v1455_v23 = vsel %vm136_vm1, %v1447_v24, 0.0  ;;  %v1452_v25 = vsel %vm136_vm1, %v1446_v44, 0.0  ;;  %3672 = vmatpush3.bf16.msra.mxu1 %v3958_v13  ;;  %v1686_v13 = vsub.s32 7, %v4292_v56 }
 0x8b8   :  { %1456 = vadd.xlane.f32.xlu0 %v1455_v23  ;;  %1453 = vadd.xlane.f32.xlu1 %v1452_v25 }
 0x8b9   :  { %v1448_v26 = vmul.f32 %v1444_v39, %v1444_v39  ;;  %3673 = vmatprep.subr.bf16.mxu1 %v3959_v17 }
 0x8bb   :  { %v1458_v49 = vsel %vm136_vm1, %v1448_v26, 0.0  ;;  %3674 = vmatpush3.bf16.msra.mxu1 %v3959_v17 }
 0x8bc   :  { %1459 = vadd.xlane.f32.xlu1 %v1458_v49  ;;  %3675 = vmatprep.subr.bf16.mxu1 %v3960_v0 }
 0x8bf   :  { %3676 = vmatpush3.bf16.msra.mxu1 %v3960_v0 }
 0x8c0   :  { %3695 = vmatprep.subr.bf16.mxu1 %v4179_v31 }
 0x93d   :  { %v1451_v34 = vpop.xlane.xlu0 %1450 }
 0x93e   :  { %v1461_v41 = vmul.f32 0.03125, %v1451_v34 }
 0x940   :  { %v1465_v16 = vadd.f32 1e-06, %v1461_v41 }
 0x941   :  { %v1457_v43 = vpop.xlane.xlu0 %1456  ;;  %v1454_v33 = vpop.xlane.xlu1 %1453 }
 0x942   :  { %4043 = vrsqrt.f32 %v1465_v16  ;;  %v1463_v47 = vmul.f32 0.03125, %v1457_v43  ;;  %v1462_v60 = vmul.f32 0.03125, %v1454_v33 }
 0x944   :  { %v1467_v22 = vadd.f32 1e-06, %v1463_v47  ;;  %v1466_v32 = vadd.f32 1e-06, %v1462_v60 }
 0x945   :  { %v1460_v1 = vpop.xlane.xlu1 %1459 }
 0x946   :  { %4045 = vrsqrt.f32 %v1467_v22  ;;  %v1464_v61 = vmul.f32 0.03125, %v1460_v1 }
 0x947   :  { %4047 = vrsqrt.f32 %v1466_v32 }
 0x948   :  { %v1468_v46 = vadd.f32 1e-06, %v1464_v61 }
 0x94a   :  { %4049 = vrsqrt.f32 %v1468_v46 }
 0x94f   :  { %v4044_v6 = vpop.eup %4043 }
 0x950   :  { %v1473_v21 = vmul.f32 %v4044_v6, %v1441_v4 }
 0x952   :  { %v1481_v30 = vmul.f32 %v1480_v27, %v1473_v21 }
 0x953   :  { %v4046_v38 = vpop.eup %4045 }
 0x954   :  { %v4048_v40 = vpop.eup %4047  ;;  %v1475_v52 = vmul.f32 %v4046_v38, %v1443_v45  ;;  %v1489_v9 = vadd.f32 %v1488_v55, %v1481_v30  ;;  %v1498_v45 = vrot.slane %v4646_v59, %v1497_v37 }
 0x955   :  { %v1474_v53 = vmul.f32 %v4048_v40, %v1442_v14 }
 0x956   :  { %v1483_v8 = vmul.f32 %v1480_v27, %v1475_v52 }
 0x957   :  { %v4050_v63 = vpop.eup %4049  ;;  %v1482_v3 = vmul.f32 %v1480_v27, %v1474_v53 }
 0x958   :  { %v1476_v7 = vmul.f32 %v4050_v63, %v1444_v39  ;;  %v1491_v18 = vadd.f32 %v1488_v55, %v1483_v8 }
 0x959   :  { %v1490_v11 = vadd.f32 %v1488_v55, %v1482_v3 }
 0x95a   :  { %v1484_v10 = vmul.f32 %v1480_v27, %v1476_v7 }
 0x95b   :  { %v1493_v15 = vpack.c.bf16 %v1490_v11, %v1489_v9 }
 0x95c   :  { %v1492_v36 = vadd.f32 %v1488_v55, %v1484_v10 }
 0x95d   :  { %3665 = vmatprep.mubr.msk.bf16.mxu0 %vm136_vm1, %v1493_v15 }
 0x95e   :  { %v1494_v4 = vpack.c.bf16 %v1492_v36, %v1491_v18 }
 0x960   :  { %3666 = vmatmul.mubr.msk.bf16.vlgmr.msra.gmra.mxu0 %vm136_vm1, %v1494_v4 }
 0xa20   :  { %v3667_v14 = vpop.f32.mrf.mxu0 }
 0xa21   :  { %v1556_v42 = vadd.f32 %v3667_v14, %v1498_v45  ;;  %v1687_v14 = vrot.slane %v4646_v59, %v1686_v13 }
 0xa22   :  { %v1547_v19 = vpop.f32.mrf.mxu0 }
 0xa23   :  { %v1568_v48 = vmul.f32 0.044715, %v1556_v42  ;;  %v1548_v24 = vadd.f32 %v1547_v19, %v1498_v45  ;;  %v1564_v11 = vmul.f32 0.5, %v1556_v42 }
 0xa24   :  { %v3668_v44 = vpop.f32.mrf.mxu0 }
 0xa25   :  { %v1572_v39 = vmul.f32 %v1568_v48, %v1556_v42  ;;  %v1566_v23 = vmul.f32 0.044715, %v1548_v24  ;;  %v1559_v25 = vadd.f32 %v3668_v44, %v1498_v45  ;;  %v1562_v7 = vmul.f32 0.5, %v1548_v24 }
 0xa26   :  { %v1550_v26 = vpop.f32.mrf.mxu0 }
 0xa27   :  { %v1576_v49 = vmul.f32 %v1572_v39, %v1556_v42  ;;  %v1570_v51 = vmul.f32 %v1566_v23, %v1548_v24  ;;  %v1569_v29 = vmul.f32 0.044715, %v1559_v25  ;;  %v1551_v34 = vadd.f32 %v1550_v26, %v1498_v45 }
 0xa28   :  { %v1565_v63 = vmul.f32 0.5, %v1559_v25 }
 0xa29   :  { %v1580_v41 = vadd.f32 %v1576_v49, %v1556_v42  ;;  %v1574_v16 = vmul.f32 %v1570_v51, %v1548_v24  ;;  %v1573_v43 = vmul.f32 %v1569_v29, %v1559_v25  ;;  %v1567_v33 = vmul.f32 0.044715, %v1551_v34 }
 0xa2a   :  { %v1563_v8 = vmul.f32 0.5, %v1551_v34 }
 0xa2b   :  { %v1584_v47 = vmul.f32 0.7978846, %v1580_v41  ;;  %v1578_v60 = vadd.f32 %v1574_v16, %v1548_v24  ;;  %v1577_v22 = vmul.f32 %v1573_v43, %v1559_v25  ;;  %v1571_v32 = vmul.f32 %v1567_v33, %v1551_v34 }
 0xa2d   :  { %v1582_v1 = vmul.f32 0.7978846, %v1578_v60  ;;  %v1581_v61 = vadd.f32 %v1577_v22, %v1559_v25  ;;  %v1575_v46 = vmul.f32 %v1571_v32, %v1551_v34  ;;  %4051 = vtanh.f32 %v1584_v47 }
 0xa2f   :  { %v1585_v6 = vmul.f32 0.7978846, %v1581_v61  ;;  %4053 = vtanh.f32 %v1582_v1  ;;  %v1579_v21 = vadd.f32 %v1575_v46, %v1551_v34 }
 0xa31   :  { %4055 = vtanh.f32 %v1585_v6  ;;  %v1583_v27 = vmul.f32 0.7978846, %v1579_v21 }
 0xa33   :  { %4057 = vtanh.f32 %v1583_v27 }
 0xa3a   :  { %v4052_v38 = vpop.eup %4051 }
 0xa3b   :  { %v1592_v3 = vadd.f32 1.0, %v4052_v38 }
 0xa3c   :  { %v4054_v40 = vpop.eup %4053 }
 0xa3d   :  { %v1590_v30 = vadd.f32 1.0, %v4054_v40  ;;  %v1596_v36 = vmul.f32 %v1592_v3, %v1564_v11  ;;  %v4750_v40 = vld [vmem:[%s5197_s3 + $0x30] ss:$8 sps:$4 sm:$0xff]  }
 0xa3e   :  { %v4056_v52 = vpop.eup %4055  ;;  %3681 = vmatprep.subr.bf16.mxu0 %v4750_v40 }
 0xa3f   :  { %v1593_v53 = vadd.f32 1.0, %v4056_v52  ;;  %v1594_v15 = vmul.f32 %v1590_v30, %v1562_v7  ;;  %v4755_v52 = vld [vmem:[%s5197_s3 + $0x20] ss:$8 sps:$4 sm:$0xff]   ;;  %3682 = vmatpush3.bf16.msra.mxu0 %v4750_v40 }
 0xa40   :  { %v4058_v55 = vpop.eup %4057  ;;  %3683 = vmatprep.subr.bf16.mxu0 %v4755_v52 }
 0xa41   :  { %v1591_v9 = vadd.f32 1.0, %v4058_v55  ;;  %v1597_v10 = vmul.f32 %v1593_v53, %v1565_v63 }
 0xa43   :  { %v1595_v18 = vmul.f32 %v1591_v9, %v1563_v8  ;;  %v1599_v12 = vpack.c.bf16 %v1597_v10, %v1596_v36  ;;  %3684 = vmatpush3.bf16.msra.mxu0 %v4755_v52  ;;  %v4765_v36 = vld [vmem:[%s5199_s5 + $0x8] sm:$0xff] }
 0xa44   :  { %3689 = vmatprep.subr.bf16.mxu0 %v4179_v31 }
 0xa45   :  { %v1598_v4 = vpack.c.bf16 %v1595_v18, %v1594_v15 }
 0xa47   :  { %3677 = vmatprep.mubr.msk.bf16.mxu1 %vm1624_vm6, %v1598_v4  ;;  %v1763_v4 = vrot.slane %v4765_v36, %v192_v57 }
 0xa48   :  { %3678 = vmatmul.mubr.msk.bf16.vlgmr.msra.gmra.mxu1 %vm1624_vm6, %v1599_v12 }
 0xa49   :  { %3697 = vmatprep.mubr.msk.bf16.mxu1 %vm4182_vm2, %v4179_v31 }
 0xb08   :  { %v3679_v17 = vpop.f32.mrf.mxu1 }
 0xb09   :  { %v1682_v45 = vadd.f32 %v3679_v17, %v4654_v5  ;;  %v1771_v17 = vrot.slane %v4765_v36, %v200_v62 }
 0xb0a   :  { %v1665_v0 = vpop.f32.mrf.mxu1 }
 0xb0b   :  { %v1680_v42 = vadd.f32 %v1665_v0, %v4652_v2  ;;  %v4723_v44 = vadd.f32 %v1687_v14, %v1682_v45 }
 0xb0c   :  { %v3680_v19 = vpop.f32.mrf.mxu1 }
 0xb0d   :  { %v4721_v48 = vadd.f32 %v1687_v14, %v1680_v42  ;;  %v1683_v39 = vadd.f32 %v3680_v19, %v4662_v54  ;;  %v1714_v59 = vsel %vm136_vm1, %v4723_v44, 0.0 }
 0xb0e   :  { %v1668_v24 = vpop.f32.mrf.mxu1 }
 0xb0f   :  { %v1681_v23 = vadd.f32 %v1668_v24, %v4660_v28  ;;  %v1708_v25 = vsel %vm136_vm1, %v4721_v48, 0.0  ;;  %v4731_v26 = vadd.f32 %v1687_v14, %v1683_v39 }
 0xb10   :  { %1709 = vadd.xlane.f32.xlu0 %v1708_v25 }
 0xb11   :  { %v4729_v5 = vadd.f32 %v1687_v14, %v1681_v23  ;;  %v1717_v54 = vsel %vm136_vm1, %v4731_v26, 0.0 }
 0xb13   :  { %v1711_v2 = vsel %vm136_vm1, %v4729_v5, 0.0 }
 0xb14   :  { %1715 = vadd.xlane.f32.xlu0 %v1714_v59  ;;  %1712 = vadd.xlane.f32.xlu1 %v1711_v2 }
 0xb18   :  { %1718 = vadd.xlane.f32.xlu1 %v1717_v54 }
 0xb99   :  { %v1710_v28 = vpop.xlane.xlu0 %1709 }
 0xb9a   :  { %v1720_v49 = vmul.f32 0.03125, %v1710_v28 }
 0xb9c   :  { %v1724_v51 = vsub.f32 %v4721_v48, %v1720_v49 }
 0xb9d   :  { %v1716_v29 = vpop.xlane.xlu0 %1715  ;;  %v1713_v34 = vpop.xlane.xlu1 %1712 }
 0xb9e   :  { %v1722_v41 = vmul.f32 0.03125, %v1716_v29  ;;  %v1721_v16 = vmul.f32 0.03125, %v1713_v34  ;;  %v1728_v43 = vmul.f32 %v1724_v51, %v1724_v51 }
 0xba0   :  { %v1726_v33 = vsub.f32 %v4723_v44, %v1722_v41  ;;  %v1725_v47 = vsub.f32 %v4729_v5, %v1721_v16  ;;  %v1732_v60 = vsel %vm136_vm1, %v1728_v43, 0.0 }
 0xba1   :  { %1733 = vadd.xlane.f32.xlu0 %v1732_v60  ;;  %v1719_v22 = vpop.xlane.xlu1 %1718 }
 0xba2   :  { %v1723_v32 = vmul.f32 0.03125, %v1719_v22  ;;  %v1730_v1 = vmul.f32 %v1726_v33, %v1726_v33  ;;  %v1729_v61 = vmul.f32 %v1725_v47, %v1725_v47 }
 0xba4   :  { %v1727_v46 = vsub.f32 %v4731_v26, %v1723_v32  ;;  %v1738_v6 = vsel %vm136_vm1, %v1730_v1, 0.0  ;;  %v1735_v21 = vsel %vm136_vm1, %v1729_v61, 0.0 }
 0xba5   :  { %1739 = vadd.xlane.f32.xlu0 %v1738_v6  ;;  %1736 = vadd.xlane.f32.xlu1 %v1735_v21 }
 0xba6   :  { %v1731_v27 = vmul.f32 %v1727_v46, %v1727_v46 }
 0xba8   :  { %v1741_v38 = vsel %vm136_vm1, %v1731_v27, 0.0 }
 0xba9   :  { %1742 = vadd.xlane.f32.xlu1 %v1741_v38 }
 0xc2a   :  { %v1734_v53 = vpop.xlane.xlu0 %1733 }
 0xc2b   :  { %v1744_v30 = vmul.f32 0.03125, %v1734_v53 }
 0xc2d   :  { %v1748_v55 = vadd.f32 1e-06, %v1744_v30 }
 0xc2e   :  { %v1740_v63 = vpop.xlane.xlu0 %1739  ;;  %v1737_v3 = vpop.xlane.xlu1 %1736 }
 0xc2f   :  { %4059 = vrsqrt.f32 %v1748_v55  ;;  %v1746_v7 = vmul.f32 0.03125, %v1740_v63  ;;  %v1745_v8 = vmul.f32 0.03125, %v1737_v3 }
 0xc31   :  { %v1750_v9 = vadd.f32 1e-06, %v1746_v7  ;;  %v1749_v11 = vadd.f32 1e-06, %v1745_v8 }
 0xc32   :  { %v1743_v10 = vpop.xlane.xlu1 %1742 }
 0xc33   :  { %4061 = vrsqrt.f32 %v1750_v9  ;;  %v1747_v15 = vmul.f32 0.03125, %v1743_v10 }
 0xc34   :  { %4063 = vrsqrt.f32 %v1749_v11 }
 0xc35   :  { %v1751_v18 = vadd.f32 1e-06, %v1747_v15 }
 0xc37   :  { %4065 = vrsqrt.f32 %v1751_v18 }
 0xc3c   :  { %v4060_v12 = vpop.eup %4059 }
 0xc3d   :  { %v1756_v0 = vmul.f32 %v4060_v12, %v1724_v51  ;;  %v1781_v51 = vrot.slane %v4765_v36, %v210_v20 }
 0xc3f   :  { %v1764_v45 = vmul.f32 %v1763_v4, %v1756_v0 }
 0xc40   :  { %v4062_v14 = vpop.eup %4061 }
 0xc41   :  { %v4064_v42 = vpop.eup %4063  ;;  %v1758_v19 = vmul.f32 %v4062_v14, %v1726_v33  ;;  %v1772_v24 = vadd.f32 %v1771_v17, %v1764_v45 }
 0xc42   :  { %v1757_v39 = vmul.f32 %v4064_v42, %v1725_v47 }
 0xc43   :  { %v1766_v23 = vmul.f32 %v1763_v4, %v1758_v19 }
 0xc44   :  { %v4066_v25 = vpop.eup %4065  ;;  %v1765_v59 = vmul.f32 %v1763_v4, %v1757_v39 }
 0xc45   :  { %v1759_v2 = vmul.f32 %v4066_v25, %v1727_v46  ;;  %v1774_v54 = vadd.f32 %v1771_v17, %v1766_v23 }
 0xc46   :  { %v1773_v28 = vadd.f32 %v1771_v17, %v1765_v59 }
 0xc47   :  { %v1767_v49 = vmul.f32 %v1763_v4, %v1759_v2 }
 0xc48   :  { %v1776_v57 = vpack.c.bf16 %v1773_v28, %v1772_v24 }
 0xc49   :  { %v1775_v29 = vadd.f32 %v1771_v17, %v1767_v49 }
 0xc4a   :  { %3685 = vmatprep.mubr.msk.bf16.mxu0 %vm136_vm1, %v1776_v57 }
 0xc4b   :  { %v1777_v34 = vpack.c.bf16 %v1775_v29, %v1774_v54 }
 0xc4d   :  { %3686 = vmatmul.mubr.msk.bf16.vlgmr.msra.gmra.mxu0 %vm136_vm1, %v1777_v34 }
 0xc4e   :  { %3691 = vmatprep.mubr.msk.bf16.mxu0 %vm4182_vm2, %v4179_v31 }
 0xd0d   :  { %v3687_v62 = vpop.f32.mrf.mxu0 }
 0xd0e   :  { %v1843_v43 = vadd.f32 %v3687_v62, %v1781_v51 }
 0xd0f   :  { %v1834_v41 = vpop.f32.mrf.mxu0 }
 0xd10   :  { %v1835_v60 = vadd.f32 %v1834_v41, %v1781_v51 }
 0xd11   :  { %v3688_v16 = vpop.f32.mrf.mxu0 }
 0xd12   :  { %v1846_v33 = vadd.f32 %v3688_v16, %v1781_v51 }
 0xd13   :  { %v1837_v47 = vpop.f32.mrf.mxu0 }
 0xd14   :  { %v1838_v22 = vadd.f32 %v1837_v47, %v1781_v51  ;;  %v3891_v32 = vpack.i.bf16 %v1846_v33, %v1843_v43  ;;  %v4790_v61 = vpack.c.bf16 %v1846_v33, %v1843_v43 }
 0xd16   :  { %3892 = vrot.lane.b32.xlu1 %v3891_v32, %s4180_s19  ;;  %v3886_v1 = vpack.i.bf16 %v1838_v22, %v1835_v60  ;;  %v4785_v20 = vpack.c.bf16 %v1838_v22, %v1835_v60 }
 0xd18   :  { %3887 = vrot.lane.b32.xlu0 %v3886_v1, %s4180_s19 }
 0xd1a   :  { %3897 = vrot.lane.b32.xlu1 %v3886_v1, %s4181_s20 }
 0xd1c   :  { %3907 = vrot.lane.b32.xlu0 %v3886_v1, %s4183_s21 }
 0xd1e   :  { %3902 = vrot.lane.b32.xlu1 %v3891_v32, %s4181_s20 }
 0xd20   :  { %1898 = vrot.lane.b32.xlu0 %v4785_v20, %s4184_s22 }
 0xd22   :  { %3912 = vrot.lane.b32.xlu1 %v3891_v32, %s4183_s21 }
 0xd26   :  { %1948 = vrot.lane.b32.xlu1 %v4790_v61, %s4184_s22 }
 0xd88   :  { %v3893_v46 = vpop.permute.xlu1 %3892 }
 0xd89   :  { %v3895_v6 = vunpack.i.h.bf16 %v3893_v46  ;;  %v3894_v21 = vunpack.i.l.bf16 %v3893_v46 }
 0xd8a   :  { %v3888_v27 = vpop.permute.xlu0 %3887 }
 0xd8b   :  { %v4794_v38 = vpack.c.bf16 %v3895_v6, %v3894_v21  ;;  %v3890_v53 = vunpack.i.h.bf16 %v3888_v27  ;;  %v3889_v30 = vunpack.i.l.bf16 %v3888_v27 }
 0xd8c   :  { %v3898_v55 = vpop.permute.xlu1 %3897 }
 0xd8d   :  { %v4796_v63 = vpack.c.bf16 %v3890_v53, %v3889_v30  ;;  %v3900_v3 = vunpack.i.h.bf16 %v3898_v55  ;;  %v3899_v7 = vunpack.i.l.bf16 %v3898_v55  ;;  %2048 = vrot.lane.b32.xlu1 %v4794_v38, %s4184_s22 }
 0xd8e   :  { %v3908_v8 = vpop.permute.xlu0 %3907 }
 0xd8f   :  { %1998 = vrot.lane.b32.xlu0 %v4796_v63, %s4184_s22  ;;  %v4802_v9 = vpack.c.bf16 %v3900_v3, %v3899_v7  ;;  %v3910_v10 = vunpack.i.h.bf16 %v3908_v8  ;;  %v3909_v15 = vunpack.i.l.bf16 %v3908_v8 }
 0xd90   :  { %v3903_v11 = vpop.permute.xlu1 %3902 }
 0xd91   :  { %v3905_v18 = vunpack.i.h.bf16 %v3903_v11  ;;  %v3904_v4 = vunpack.i.l.bf16 %v3903_v11  ;;  %v4809_v14 = vpack.c.bf16 %v3910_v10, %v3909_v15 }
 0xd92   :  { %v1899_v12 = vpop.permute.xlu0 %1898 }
 0xd93   :  { %v4804_v17 = vpack.c.bf16 %v3905_v18, %v3904_v4  ;;  %v1904_v0 = vsel %vm330_vm3, %v1899_v12, 0  ;;  %2098 = vrot.lane.b32.xlu0 %v4802_v9, %s4184_s22 }
 0xd94   :  { %v3913_v45 = vpop.permute.xlu1 %3912  ;;  %3690 = vmatpush3.bf16.xpose.msra.mxu0 %v1904_v0 }
 0xd95   :  { %v3915_v42 = vunpack.i.h.bf16 %v3913_v45  ;;  %v3914_v19 = vunpack.i.l.bf16 %v3913_v45  ;;  %2148 = vrot.lane.b32.xlu1 %v4804_v17, %s4184_s22  ;;  %3701 = vmatprep.subr.bf16.mxu0 %v4179_v31 }
 0xd97   :  { %v4814_v24 = vpack.c.bf16 %v3915_v42, %v3914_v19  ;;  %2198 = vrot.lane.b32.xlu0 %v4809_v14, %s4184_s22 }
 0xd98   :  { %v1949_v39 = vpop.permute.xlu1 %1948 }
 0xd99   :  { %v1954_v23 = vsel %vm330_vm3, %v1949_v39, 0  ;;  %2248 = vrot.lane.b32.xlu1 %v4814_v24, %s4184_s22 }
 0xd9a   :  { %3696 = vmatpush3.bf16.xpose.msra.mxu1 %v1954_v23 }
 0xd9b   :  { %3692 = vmatmul.mubr.msk.bf16.vlgmr.msra.gmra.mxu0 %vm330_vm3, %v4785_v20  ;;  %3707 = vmatprep.subr.bf16.mxu1 %v4179_v31 }
 0xd9c   :  { %3703 = vmatprep.mubr.msk.bf16.mxu0 %vm4182_vm2, %v4179_v31 }
 0xda1   :  { %3698 = vmatmul.mubr.msk.bf16.vlgmr.msra.gmra.mxu1 %vm330_vm3, %v4790_v61 }
 0xda2   :  { %3709 = vmatprep.mubr.msk.bf16.mxu1 %vm4182_vm2, %v4179_v31 }
 0xdff   :  { %v2049_v25 = vpop.permute.xlu1 %2048 }
 0xe00   :  { %v2054_v59 = vsel %vm330_vm3, %v2049_v25, 0 }
 0xe01   :  { %3708 = vmatpush3.bf16.xpose.msra.mxu1 %v2054_v59  ;;  %v1999_v2 = vpop.permute.xlu0 %1998 }
 0xe02   :  { %v2004_v54 = vsel %vm330_vm3, %v1999_v2, 0  ;;  %3719 = vmatprep.subr.bf16.mxu1 %v4179_v31 }
 0xe03   :  { %3702 = vmatpush3.bf16.xpose.msra.mxu0 %v2004_v54 }
 0xe04   :  { %3713 = vmatprep.subr.bf16.mxu0 %v4179_v31 }
 0xe05   :  { %v2099_v28 = vpop.permute.xlu0 %2098 }
 0xe06   :  { %v2104_v29 = vsel %vm330_vm3, %v2099_v28, 0 }
 0xe07   :  { %v2149_v49 = vpop.permute.xlu1 %2148 }
 0xe08   :  { %v2154_v57 = vsel %vm330_vm3, %v2149_v49, 0  ;;  %3710 = vmatmul.mubr.msk.bf16.vlgmr.msra.gmra.mxu1 %vm330_vm3, %v4794_v38 }
 0xe09   :  { %3720 = vmatpush3.bf16.xpose.msra.mxu1 %v2154_v57  ;;  %3721 = vmatprep.mubr.msk.bf16.mxu1 %vm4182_vm2, %v4179_v31  ;;  %v2199_v62 = vpop.permute.xlu0 %2198 }
 0xe0a   :  { %3704 = vmatmul.mubr.msk.bf16.vlgmr.msra.gmra.mxu0 %vm330_vm3, %v4796_v63  ;;  %3731 = vmatprep.subr.bf16.mxu1 %v4179_v31  ;;  %v2204_v41 = vsel %vm330_vm3, %v2199_v62, 0 }
 0xe0b   :  { %3714 = vmatpush3.bf16.xpose.msra.mxu0 %v2104_v29  ;;  %3715 = vmatprep.mubr.msk.bf16.mxu0 %vm4182_vm2, %v4179_v31  ;;  %v2249_v34 = vpop.permute.xlu1 %2248 }
 0xe0c   :  { %3725 = vmatprep.subr.bf16.mxu0 %v4179_v31  ;;  %v2254_v51 = vsel %vm330_vm3, %v2249_v34, 0 }
 0xe10   :  { %3722 = vmatmul.mubr.msk.bf16.vlgmr.msra.gmra.mxu1 %vm330_vm3, %v4804_v17 }
 0xe11   :  { %3732 = vmatpush3.bf16.xpose.msra.mxu1 %v2254_v51  ;;  %3733 = vmatprep.mubr.msk.bf16.mxu1 %vm4182_vm2, %v4179_v31 }
 0xe12   :  { %3716 = vmatmul.mubr.msk.bf16.vlgmr.msra.gmra.mxu0 %vm330_vm3, %v4802_v9  ;;  %3743 = vmatprep.subr.bf16.mxu1 %v4179_v31 }
 0xe13   :  { %3726 = vmatpush3.bf16.xpose.msra.mxu0 %v2204_v41  ;;  %3727 = vmatprep.mubr.msk.bf16.mxu0 %vm4182_vm2, %v4179_v31 }
 0xe14   :  { %3737 = vmatprep.subr.bf16.mxu0 %v4179_v31 }
 0xe18   :  { %3734 = vmatmul.mubr.msk.bf16.vlgmr.msra.gmra.mxu1 %vm330_vm3, %v4814_v24 }
 0xe19   :  { %3745 = vmatprep.mubr.msk.bf16.mxu1 %vm4182_vm2, %v4179_v31 }
 0xe1a   :  { %3728 = vmatmul.mubr.msk.bf16.vlgmr.msra.gmra.mxu0 %vm330_vm3, %v4809_v14 }
 0xe1b   :  { %3739 = vmatprep.mubr.msk.bf16.mxu0 %vm4182_vm2, %v4179_v31 }
 0xe5b   :  { %v4866_v16 = vpop.f32.mrf.mxu0 }
 0xe5c   :  { %v2297_v6 = vsel %vm728_vm4, %v4866_v16, -inf }
 0xe5d   :  { %v3693_v43 = vpop.f32.mrf.mxu0 }
 0xe5f   :  { %v4868_v33 = vpop.f32.mrf.mxu0 }
 0xe60   :  { %v2300_v47 = vsel %vm728_vm4, %v4868_v33, -inf }
 0xe61   :  { %v4872_v60 = vpop.f32.mrf.mxu1  ;;  %2301 = vmax.xlane.f32.xlu1 %v2300_v47  ;;  %v3694_v22 = vpop.f32.mrf.mxu0 }
 0xe62   :  { %v2303_v32 = vsel %vm728_vm4, %v4872_v60, -inf }
 0xe63   :  { %v3699_v1 = vpop.f32.mrf.mxu1  ;;  %2304 = vmax.xlane.f32.xlu0 %v2303_v32 }
 0xe65   :  { %v4876_v46 = vpop.f32.mrf.mxu1 }
 0xe66   :  { %v2306_v27 = vsel %vm728_vm4, %v4876_v46, -inf }
 0xe67   :  { %v3700_v21 = vpop.f32.mrf.mxu1  ;;  %2298 = vmax.xlane.f32.xlu0 %v2297_v6 }
 0xe6b   :  { %2307 = vmax.xlane.f32.xlu0 %v2306_v27 }
 0xec8   :  { %v4882_v53 = vpop.f32.mrf.mxu1 }
 0xec9   :  { %v2315_v30 = vsel %vm728_vm4, %v4882_v53, -inf }
 0xeca   :  { %v3711_v55 = vpop.f32.mrf.mxu1  ;;  %2316 = vmax.xlane.f32.xlu0 %v2315_v30  ;;  %v4886_v3 = vpop.f32.mrf.mxu0 }
 0xecb   :  { %v2309_v10 = vsel %vm728_vm4, %v4886_v3, -inf }
 0xecc   :  { %v3705_v7 = vpop.f32.mrf.mxu0  ;;  %v4888_v8 = vpop.f32.mrf.mxu1 }
 0xecd   :  { %v2318_v11 = vsel %vm728_vm4, %v4888_v8, -inf }
 0xece   :  { %v3712_v15 = vpop.f32.mrf.mxu1  ;;  %2319 = vmax.xlane.f32.xlu1 %v2318_v11  ;;  %2310 = vmax.xlane.f32.xlu0 %v2309_v10  ;;  %v4894_v18 = vpop.f32.mrf.mxu0 }
 0xecf   :  { %v2312_v45 = vsel %vm728_vm4, %v4894_v18, -inf }
 0xed0   :  { %v3706_v4 = vpop.f32.mrf.mxu0  ;;  %v4896_v12 = vpop.f32.mrf.mxu1 }
 0xed1   :  { %v2327_v0 = vsel %vm728_vm4, %v4896_v12, -inf }
 0xed2   :  { %v3723_v42 = vpop.f32.mrf.mxu1  ;;  %2328 = vmax.xlane.f32.xlu0 %v2327_v0  ;;  %2313 = vmax.xlane.f32.xlu1 %v2312_v45  ;;  %v4902_v19 = vpop.f32.mrf.mxu0 }
 0xed3   :  { %v2321_v59 = vsel %vm728_vm4, %v4902_v19, -inf }
 0xed4   :  { %v3717_v39 = vpop.f32.mrf.mxu0  ;;  %v4904_v23 = vpop.f32.mrf.mxu1 }
 0xed5   :  { %v2330_v25 = vsel %vm728_vm4, %v4904_v23, -inf }
 0xed6   :  { %v3724_v2 = vpop.f32.mrf.mxu1  ;;  %2331 = vmax.xlane.f32.xlu1 %v2330_v25  ;;  %2322 = vmax.xlane.f32.xlu0 %v2321_v59  ;;  %v4910_v54 = vpop.f32.mrf.mxu0 }
 0xed7   :  { %v2324_v29 = vsel %vm728_vm4, %v4910_v54, -inf }
 0xed8   :  { %v3718_v28 = vpop.f32.mrf.mxu0  ;;  %v4912_v49 = vpop.f32.mrf.mxu1 }
 0xed9   :  { %v2339_v57 = vsel %vm728_vm4, %v4912_v49, -inf }
 0xeda   :  { %v3735_v34 = vpop.f32.mrf.mxu1  ;;  %2340 = vmax.xlane.f32.xlu0 %v2339_v57  ;;  %2325 = vmax.xlane.f32.xlu1 %v2324_v29  ;;  %v4918_v62 = vpop.f32.mrf.mxu0 }
 0xedb   :  { %v2333_v43 = vsel %vm728_vm4, %v4918_v62, -inf }
 0xedc   :  { %v3729_v51 = vpop.f32.mrf.mxu0  ;;  %v4920_v41 = vpop.f32.mrf.mxu1 }
 0xede   :  { %v3736_v47 = vpop.f32.mrf.mxu1  ;;  %2334 = vmax.xlane.f32.xlu0 %v2333_v43  ;;  %v4924_v22 = vpop.f32.mrf.mxu0 }
 0xee0   :  { %v3730_v32 = vpop.f32.mrf.mxu0 }
 0xeea   :  { %v2302_v11 = vpop.xlane.xlu1 %2301 }
 0xeeb   :  { %2528 = vrot.lane.b32.xlu1 %v4790_v61, %s4185_s23  ;;  %v2346_v10 = vsub.f32 %v4868_v33, %v2302_v11 }
 0xeec   :  { %v2305_v1 = vpop.xlane.xlu0 %2304 }
 0xeed   :  { %v2347_v6 = vsub.f32 %v4872_v60, %v2305_v1  ;;  %v2363_v4 = vmul.f32 1.442695, %v2346_v10 }
 0xeef   :  { %2575 = vrot.lane.b32.xlu1 %v4796_v63, %s4185_s23  ;;  %v2365_v27 = vmul.f32 1.442695, %v2347_v6 }
 0xef0   :  { %v2299_v21 = vpop.xlane.xlu0 %2298 }
 0xef1   :  { %v2345_v30 = vsub.f32 %v4866_v16, %v2299_v21  ;;  %4067 = vpow2.f32 %v2365_v27 }
 0xef3   :  { %2622 = vrot.lane.b32.xlu1 %v4794_v38, %s4185_s23  ;;  %v2361_v61 = vmul.f32 1.442695, %v2345_v30  ;;  %v2342_v38 = vsel %vm728_vm4, %v4920_v41, -inf }
 0xef4   :  { %2481 = vrot.lane.b32.xlu0 %v4785_v20, %s4185_s23  ;;  %v2308_v60 = vpop.xlane.xlu0 %2307 }
 0xef5   :  { %4069 = vpow2.f32 %v2361_v61  ;;  %v2348_v7 = vsub.f32 %v4876_v46, %v2308_v60 }
 0xef7   :  { %v2367_v15 = vmul.f32 1.442695, %v2348_v7 }
 0xef8   :  { %2669 = vrot.lane.b32.xlu0 %v4802_v9, %s4185_s23  ;;  %v2336_v9 = vsel %vm728_vm4, %v4924_v22, -inf }
 0xef9   :  { %4071 = vpow2.f32 %v2367_v15 }
 0xefa   :  { %4073 = vpow2.f32 %v2363_v4 }
 0xefe   :  { %v4938_v63 = vpop.eup %4067 }
 0xeff   :  { %v2399_v20 = vsel %vm728_vm4, %v4938_v63, 0.0 }
 0xf02   :  { %v4944_v55 = vpop.eup %4069 }
 0xf03   :  { %v2393_v16 = vsel %vm728_vm4, %v4944_v55, 0.0 }
 0xf06   :  { %v4954_v0 = vpop.eup %4071 }
 0xf07   :  { %v2402_v45 = vsel %vm728_vm4, %v4954_v0, 0.0  ;;  %v4958_v42 = vpop.eup %4073 }
 0xf17   :  { %2343 = vmax.xlane.f32.xlu1 %v2342_v38  ;;  %2400 = vadd.xlane.f32.xlu0 %v2399_v20 }
 0xf1b   :  { %2337 = vmax.xlane.f32.xlu1 %v2336_v9  ;;  %2394 = vadd.xlane.f32.xlu0 %v2393_v16 }
 0xf2c   :  { %2716 = vrot.lane.b32.xlu1 %v4804_v17, %s4185_s23  ;;  %v2396_v17 = vsel %vm728_vm4, %v4958_v42, 0.0 }
 0xf50   :  { %2403 = vadd.xlane.f32.xlu1 %v2402_v45 }
 0xf53   :  { %v2317_v39 = vpop.xlane.xlu0 %2316 }
 0xf54   :  { %v2351_v46 = vsub.f32 %v4882_v53, %v2317_v39  ;;  %2397 = vadd.xlane.f32.xlu1 %v2396_v17 }
 0xf56   :  { %v2373_v33 = vmul.f32 1.442695, %v2351_v46 }
 0xf57   :  { %v2320_v25 = vpop.xlane.xlu1 %2319  ;;  %v2311_v59 = vpop.xlane.xlu0 %2310 }
 0xf58   :  { %4075 = vpow2.f32 %v2373_v33  ;;  %v2352_v2 = vsub.f32 %v4888_v8, %v2320_v25  ;;  %v2349_v28 = vsub.f32 %v4886_v3, %v2311_v59 }
 0xf5a   :  { %v2375_v57 = vmul.f32 1.442695, %v2352_v2  ;;  %v2369_v29 = vmul.f32 1.442695, %v2349_v28 }
 0xf5b   :  { %v2314_v34 = vpop.xlane.xlu1 %2313  ;;  %v2329_v51 = vpop.xlane.xlu0 %2328 }
 0xf5c   :  { %4077 = vpow2.f32 %v2375_v57  ;;  %v2350_v43 = vsub.f32 %v4894_v18, %v2314_v34  ;;  %v2355_v47 = vsub.f32 %v4896_v12, %v2329_v51 }
 0xf5d   :  { %4079 = vpow2.f32 %v2369_v29 }
 0xf5e   :  { %v2371_v53 = vmul.f32 1.442695, %v2350_v43  ;;  %v2381_v32 = vmul.f32 1.442695, %v2355_v47 }
 0xf5f   :  { %v2332_v1 = vpop.xlane.xlu1 %2331  ;;  %v2323_v6 = vpop.xlane.xlu0 %2322 }
 0xf60   :  { %4081 = vpow2.f32 %v2371_v53  ;;  %v2356_v21 = vsub.f32 %v4904_v23, %v2332_v1  ;;  %v2353_v8 = vsub.f32 %v4902_v19, %v2323_v6 }
 0xf61   :  { %4083 = vpow2.f32 %v2381_v32 }
 0xf62   :  { %v2383_v3 = vmul.f32 1.442695, %v2356_v21  ;;  %v2377_v27 = vmul.f32 1.442695, %v2353_v8 }
 0xf63   :  { %v2326_v30 = vpop.xlane.xlu1 %2325  ;;  %v2341_v61 = vpop.xlane.xlu0 %2340 }
 0xf64   :  { %4085 = vpow2.f32 %v2383_v3  ;;  %v2354_v18 = vsub.f32 %v4910_v54, %v2326_v30  ;;  %v2359_v12 = vsub.f32 %v4912_v49, %v2341_v61 }
 0xf65   :  { %v4971_v38 = vpop.eup %4075  ;;  %4087 = vpow2.f32 %v2377_v27 }
 0xf66   :  { %v2379_v20 = vmul.f32 1.442695, %v2354_v18  ;;  %v2389_v9 = vmul.f32 1.442695, %v2359_v12  ;;  %v2411_v23 = vsel %vm728_vm4, %v4971_v38, 0.0 }
 0xf67   :  { %v2529_v16 = vpop.permute.xlu1 %2528  ;;  %2412 = vadd.xlane.f32.xlu0 %v2411_v23  ;;  %v2335_v19 = vpop.xlane.xlu0 %2334 }
 0xf68   :  { %4089 = vpow2.f32 %v2379_v20  ;;  %v2357_v60 = vsub.f32 %v4918_v62, %v2335_v19  ;;  %3744 = vmatpush3.bf16.msra.mxu1 %v2529_v16 }
 0xf69   :  { %v4976_v7 = vpop.eup %4077  ;;  %4091 = vpow2.f32 %v2389_v9  ;;  %3755 = vmatprep.subr.bf16.mxu1 %v4179_v31 }
 0xf6a   :  { %v4979_v54 = vpop.eup %4079  ;;  %v2385_v49 = vmul.f32 1.442695, %v2357_v60  ;;  %v2414_v11 = vsel %vm728_vm4, %v4976_v7, 0.0 }
 0xf6b   :  { %2415 = vadd.xlane.f32.xlu1 %v2414_v11  ;;  %v2405_v10 = vsel %vm728_vm4, %v4979_v54, 0.0  ;;  %v2482_v15 = vpop.permute.xlu0 %2481  ;;  %v2576_v51 = vpop.permute.xlu1 %2575 }
 0xf6c   :  { %4093 = vpow2.f32 %v2385_v49  ;;  %2406 = vadd.xlane.f32.xlu0 %v2405_v10  ;;  %3738 = vmatpush3.bf16.msra.mxu0 %v2482_v15 }
 0xf6d   :  { %v4985_v62 = vpop.eup %4081  ;;  %3749 = vmatprep.subr.bf16.mxu0 %v4179_v31 }
 0xf6e   :  { %v4988_v4 = vpop.eup %4083  ;;  %v2408_v45 = vsel %vm728_vm4, %v4985_v62, 0.0 }
 0xf6f   :  { %2409 = vadd.xlane.f32.xlu1 %v2408_v45  ;;  %v2423_v39 = vsel %vm728_vm4, %v4988_v4, 0.0  ;;  %v2623_v43 = vpop.permute.xlu1 %2622 }
 0xf70   :  { %2424 = vadd.xlane.f32.xlu0 %v2423_v39 }
 0xf71   :  { %v4994_v17 = vpop.eup %4085 }
 0xf72   :  { %v4996_v46 = vpop.eup %4087  ;;  %v2426_v33 = vsel %vm728_vm4, %v4994_v17, 0.0 }
 0xf73   :  { %2427 = vadd.xlane.f32.xlu1 %v2426_v33  ;;  %v2417_v25 = vsel %vm728_vm4, %v4996_v46, 0.0 }
 0xf74   :  { %2418 = vadd.xlane.f32.xlu0 %v2417_v25 }
 0xf75   :  { %v5002_v59 = vpop.eup %4089 }
 0xf76   :  { %v5004_v2 = vpop.eup %4091  ;;  %v2420_v28 = vsel %vm728_vm4, %v5002_v59, 0.0 }
 0xf77   :  { %2421 = vadd.xlane.f32.xlu1 %v2420_v28  ;;  %v2435_v57 = vsel %vm728_vm4, %v5004_v2, 0.0 }
 0xf78   :  { %2436 = vadd.xlane.f32.xlu0 %v2435_v57 }
 0xf79   :  { %v5010_v29 = vpop.eup %4093 }
 0xf7a   :  { %v2429_v34 = vsel %vm728_vm4, %v5010_v29, 0.0 }
 0xf7c   :  { %2430 = vadd.xlane.f32.xlu0 %v2429_v34 }
 0xf92   :  { %2763 = vrot.lane.b32.xlu0 %v4809_v14, %s4185_s23 }
 0xf96   :  { %2921 = vrot.lane.b32.xlu0 %v4750_v40, %s4186_s24 }
 0xfa0   :  { %v2344_v47 = vpop.xlane.xlu1 %2343 }
 0xfa1   :  { %v2360_v53 = vsub.f32 %v4920_v41, %v2344_v47  ;;  %v5030_v41 = vpop.permute.xlu0 %2669 }
 0xfa3   :  { %v2391_v32 = vmul.f32 1.442695, %v2360_v53 }
 0xfa4   :  { %v2338_v1 = vpop.xlane.xlu1 %2337 }
 0xfa5   :  { %4095 = vpow2.f32 %v2391_v32  ;;  %v2358_v6 = vsub.f32 %v4924_v22, %v2338_v1  ;;  %v2401_v22 = vpop.xlane.xlu0 %2400 }
 0xfa7   :  { %v2387_v21 = vmul.f32 1.442695, %v2358_v6 }
 0xfa8   :  { %v2717_v27 = vpop.permute.xlu1 %2716 }
 0xfa9   :  { %4097 = vpow2.f32 %v2387_v21  ;;  %v2395_v30 = vpop.xlane.xlu0 %2394 }
 0xfaa   :  { %4099 = vrcp.f32 %v2401_v22 }
 0xfb2   :  { %v5020_v8 = vpop.eup %4095 }
 0xfb3   :  { %v2438_v14 = vsel %vm728_vm4, %v5020_v8, 0.0 }
 0xfb4   :  { %2439 = vadd.xlane.f32.xlu1 %v2438_v14 }
 0xfb6   :  { %v5024_v3 = vpop.eup %4097 }
 0xfb7   :  { %v2432_v40 = vsel %vm728_vm4, %v5024_v3, 0.0  ;;  %v4100_v12 = vpop.eup %4099 }
 0xfb8   :  { %2433 = vadd.xlane.f32.xlu1 %v2432_v40  ;;  %v2459_v9 = vmul.f32 %v4100_v12, %v4938_v63 }
 0xfc9   :  { %2810 = vrot.lane.b32.xlu1 %v4814_v24, %s4185_s23 }
 0xfd9   :  { %v2404_v61 = vpop.xlane.xlu1 %2403 }
 0xfda   :  { %4101 = vrcp.f32 %v2404_v61 }
 0xfdb   :  { %4103 = vrcp.f32 %v2395_v30 }
 0xfdd   :  { %v2398_v18 = vpop.xlane.xlu1 %2397 }
 0xfde   :  { %4105 = vrcp.f32 %v2398_v18 }
 0xfe7   :  { %v4102_v20 = vpop.eup %4101 }
 0xfe8   :  { %v2460_v23 = vmul.f32 %v4102_v20, %v4954_v0  ;;  %v4104_v16 = vpop.eup %4103 }
 0xfe9   :  { %v2457_v60 = vmul.f32 %v4104_v16, %v4944_v55 }
 0xfea   :  { %v2474_v19 = vpack.c.bf16 %v2460_v23, %v2459_v9 }
 0xfeb   :  { %v4106_v24 = vpop.eup %4105 }
 0xfec   :  { %3746 = vmatmul.mubr.msk.bf16.vlgmr.msra.gmra.mxu1 %vm728_vm4, %v2474_v19  ;;  %v2458_v49 = vmul.f32 %v4106_v24, %v4958_v42 }
 0xfed   :  { %3756 = vmatpush3.bf16.msra.mxu1 %v2623_v43  ;;  %3757 = vmatprep.mubr.msk.bf16.mxu1 %vm4182_vm2, %v4179_v31 }
 0xfee   :  { %v2473_v11 = vpack.c.bf16 %v2458_v49, %v2457_v60  ;;  %3767 = vmatprep.subr.bf16.mxu1 %v4179_v31 }
 0xff0   :  { %3740 = vmatmul.mubr.msk.bf16.vlgmr.msra.gmra.mxu0 %vm728_vm4, %v2473_v11  ;;  %v2413_v63 = vpop.xlane.xlu0 %2412 }
 0xff1   :  { %3750 = vmatpush3.bf16.msra.mxu0 %v2576_v51  ;;  %3751 = vmatprep.mubr.msk.bf16.mxu0 %vm4182_vm2, %v4179_v31  ;;  %4107 = vrcp.f32 %v2413_v63 }
 0xff2   :  { %3761 = vmatprep.subr.bf16.mxu0 %v4179_v31 }
 0xff4   :  { %v2416_v55 = vpop.xlane.xlu1 %2415 }
 0xff5   :  { %4109 = vrcp.f32 %v2416_v55  ;;  %v2407_v0 = vpop.xlane.xlu0 %2406 }
 0xff6   :  { %4111 = vrcp.f32 %v2407_v0 }
 0xff8   :  { %v2410_v42 = vpop.xlane.xlu1 %2409 }
 0xff9   :  { %4113 = vrcp.f32 %v2410_v42  ;;  %v2425_v10 = vpop.xlane.xlu0 %2424 }
 0xffa   :  { %4115 = vrcp.f32 %v2425_v10 }
 0xffc   :  { %v2428_v15 = vpop.xlane.xlu1 %2427 }
 0xffd   :  { %4117 = vrcp.f32 %v2428_v15  ;;  %v2419_v45 = vpop.xlane.xlu0 %2418 }
 0xffe   :  { %4119 = vrcp.f32 %v2419_v45  ;;  %v4108_v39 = vpop.eup %4107 }
 0xfff   :  { %v2463_v28 = vmul.f32 %v4108_v39, %v4971_v38 }
0x1000   :  { %v2422_v33 = vpop.xlane.xlu1 %2421 }
0x1001   :  { %4121 = vrcp.f32 %v2422_v33  ;;  %v2437_v47 = vpop.xlane.xlu0 %2436 }
0x1002   :  { %v4110_v25 = vpop.eup %4109  ;;  %4123 = vrcp.f32 %v2437_v47 }
0x1003   :  { %v2464_v57 = vmul.f32 %v4110_v25, %v4976_v7  ;;  %v4112_v34 = vpop.eup %4111 }
0x1004   :  { %v2461_v53 = vmul.f32 %v4112_v34, %v4979_v54 }
0x1005   :  { %v2476_v51 = vpack.c.bf16 %v2464_v57, %v2463_v28  ;;  %v2431_v54 = vpop.xlane.xlu0 %2430 }
0x1006   :  { %v4114_v43 = vpop.eup %4113 }
0x1007   :  { %3758 = vmatmul.mubr.msk.bf16.vlgmr.msra.gmra.mxu1 %vm728_vm4, %v2476_v51  ;;  %v2462_v32 = vmul.f32 %v4114_v43, %v4985_v62  ;;  %v4116_v1 = vpop.eup %4115 }
0x1008   :  { %3768 = vmatpush3.bf16.msra.mxu1 %v2717_v27  ;;  %3769 = vmatprep.mubr.msk.bf16.mxu1 %vm4182_vm2, %v4179_v31  ;;  %v2467_v7 = vmul.f32 %v4116_v1, %v4988_v4 }
0x1009   :  { %v2475_v6 = vpack.c.bf16 %v2462_v32, %v2461_v53  ;;  %3779 = vmatprep.subr.bf16.mxu1 %v4179_v31 }
0x100a   :  { %v4118_v38 = vpop.eup %4117 }
0x100b   :  { %3752 = vmatmul.mubr.msk.bf16.vlgmr.msra.gmra.mxu0 %vm728_vm4, %v2475_v6  ;;  %v2468_v21 = vmul.f32 %v4118_v38, %v4994_v17  ;;  %v4120_v14 = vpop.eup %4119  ;;  %v2764_v17 = vpop.permute.xlu0 %2763 }
0x100c   :  { %3762 = vmatpush3.bf16.msra.mxu0 %v5030_v41  ;;  %3763 = vmatprep.mubr.msk.bf16.mxu0 %vm4182_vm2, %v4179_v31  ;;  %v2465_v22 = vmul.f32 %v4120_v14, %v4996_v46 }
0x100d   :  { %v2478_v62 = vpack.c.bf16 %v2468_v21, %v2467_v7  ;;  %3773 = vmatprep.subr.bf16.mxu0 %v4179_v31 }
0x100e   :  { %v4122_v40 = vpop.eup %4121 }
0x100f   :  { %3770 = vmatmul.mubr.msk.bf16.vlgmr.msra.gmra.mxu1 %vm728_vm4, %v2478_v62  ;;  %v2466_v27 = vmul.f32 %v4122_v40, %v5002_v59  ;;  %v4124_v59 = vpop.eup %4123  ;;  %v2922_v24 = vpop.permute.xlu0 %2921 }
0x1010   :  { %3781 = vmatprep.mubr.msk.bf16.mxu1 %vm4182_vm2, %v4179_v31  ;;  %v2471_v18 = vmul.f32 %v4124_v59, %v5004_v2 }
0x1011   :  { %v2477_v4 = vpack.c.bf16 %v2466_v27, %v2465_v22 }
0x1013   :  { %3764 = vmatmul.mubr.msk.bf16.vlgmr.msra.gmra.mxu0 %vm728_vm4, %v2477_v4 }
0x1014   :  { %3774 = vmatpush3.bf16.msra.mxu0 %v2764_v17  ;;  %3775 = vmatprep.mubr.msk.bf16.mxu0 %vm4182_vm2, %v4179_v31 }
0x1015   :  { %3785 = vmatprep.subr.bf16.mxu0 %v2922_v24 }
0x103d   :  { %v2440_v41 = vpop.xlane.xlu1 %2439 }
0x103e   :  { %4125 = vrcp.f32 %v2440_v41 }
0x103f   :  { %4127 = vrcp.f32 %v2431_v54 }
0x1041   :  { %v2434_v30 = vpop.xlane.xlu1 %2433 }
0x1042   :  { %4129 = vrcp.f32 %v2434_v30 }
0x1045   :  { %v2811_v46 = vpop.permute.xlu1 %2810 }
0x1046   :  { %3780 = vmatpush3.bf16.msra.mxu1 %v2811_v46 }
0x104b   :  { %v4126_v61 = vpop.eup %4125 }
0x104c   :  { %v2472_v12 = vmul.f32 %v4126_v61, %v5020_v8  ;;  %v4128_v20 = vpop.eup %4127 }
0x104d   :  { %v2469_v31 = vmul.f32 %v4128_v20, %v5010_v29 }
0x104e   :  { %v2480_v9 = vpack.c.bf16 %v2472_v12, %v2471_v18 }
0x104f   :  { %v4130_v23 = vpop.eup %4129 }
0x1050   :  { %3782 = vmatmul.mubr.msk.bf16.vlgmr.msra.gmra.mxu1 %vm728_vm4, %v2480_v9  ;;  %v2470_v16 = vmul.f32 %v4130_v23, %v5024_v3 }
0x1052   :  { %v2479_v19 = vpack.c.bf16 %v2470_v16, %v2469_v31 }
0x1054   :  { %3776 = vmatmul.mubr.msk.bf16.vlgmr.msra.gmra.mxu0 %vm728_vm4, %v2479_v19 }
0x1055   :  { %3786 = vmatpush3.bf16.msra.mxu0 %v2922_v24 }
0x10ac   :  { %v2568_v60 = vpop.f32.mrf.mxu1 }
0x10ae   :  { %v3747_v49 = vpop.f32.mrf.mxu1 }
0x10b0   :  { %v5073_v2 = vpop.f32.mrf.mxu0  ;;  %v2571_v8 = vpop.f32.mrf.mxu1 }
0x10b2   :  { %v3741_v11 = vpop.f32.mrf.mxu0  ;;  %v3748_v63 = vpop.f32.mrf.mxu1 }
0x10b4   :  { %v2524_v55 = vpop.f32.mrf.mxu0 }
0x10b6   :  { %v3742_v0 = vpop.f32.mrf.mxu0 }
0x10c7   :  { %v2662_v42 = vpop.f32.mrf.mxu1 }
0x10c9   :  { %v3759_v10 = vpop.f32.mrf.mxu1 }
0x10cb   :  { %v2615_v29 = vpop.f32.mrf.mxu0  ;;  %v2665_v15 = vpop.f32.mrf.mxu1 }
0x10cc   :  { %v3916_v3 = vpack.i.bf16 %v2665_v15, %v2662_v42 }
0x10cd   :  { %v3753_v45 = vpop.f32.mrf.mxu0  ;;  %v3760_v39 = vpop.f32.mrf.mxu1 }
0x10ce   :  { %3917 = vrot.lane.b32.xlu0 %v3916_v3, %s4187_s25 }
0x10cf   :  { %v2618_v33 = vpop.f32.mrf.mxu0  ;;  %v2756_v25 = vpop.f32.mrf.mxu1 }
0x10d0   :  { %v3921_v28 = vpack.i.bf16 %v2618_v33, %v2615_v29 }
0x10d1   :  { %v3754_v57 = vpop.f32.mrf.mxu0  ;;  %v3771_v34 = vpop.f32.mrf.mxu1 }
0x10d2   :  { %3922 = vrot.lane.b32.xlu1 %v3921_v28, %s4187_s25 }
0x10d3   :  { %v2709_v51 = vpop.f32.mrf.mxu0  ;;  %v2759_v43 = vpop.f32.mrf.mxu1 }
0x10d4   :  { %v3926_v47 = vpack.i.bf16 %v2759_v43, %v2756_v25  ;;  %v2987_v43 = vrot.slane %v4765_v36, %v1419_v58 }
0x10d5   :  { %v3765_v53 = vpop.f32.mrf.mxu0  ;;  %v3772_v32 = vpop.f32.mrf.mxu1 }
0x10d6   :  { %3927 = vrot.lane.b32.xlu0 %v3926_v47, %s4188_s26 }
0x10d7   :  { %v2712_v1 = vpop.f32.mrf.mxu0 }
0x10d8   :  { %v3931_v6 = vpack.i.bf16 %v2712_v1, %v2709_v51 }
0x10d9   :  { %v3766_v38 = vpop.f32.mrf.mxu0 }
0x10da   :  { %3932 = vrot.lane.b32.xlu1 %v3931_v6, %s4188_s26  ;;  %2919 = vrot.lane.b32.xlu0 %v4755_v52, %s4186_s24 }
0x1110   :  { %v2850_v7 = vpop.f32.mrf.mxu1 }
0x1112   :  { %v3783_v21 = vpop.f32.mrf.mxu1 }
0x1114   :  { %v2803_v14 = vpop.f32.mrf.mxu0  ;;  %v2853_v54 = vpop.f32.mrf.mxu1 }
0x1115   :  { %v3941_v17 = vpack.i.bf16 %v2853_v54, %v2850_v7 }
0x1116   :  { %v3777_v62 = vpop.f32.mrf.mxu0  ;;  %v3784_v40 = vpop.f32.mrf.mxu1 }
0x1118   :  { %v2806_v22 = vpop.f32.mrf.mxu0 }
0x1119   :  { %v3936_v27 = vpack.i.bf16 %v2806_v22, %v2803_v14 }
0x111a   :  { %v3778_v4 = vpop.f32.mrf.mxu0 }
0x111b   :  { %3937 = vrot.lane.b32.xlu1 %v3936_v27, %s4189_s27 }
0x111f   :  { %3942 = vrot.lane.b32.xlu1 %v3941_v17, %s4189_s27 }
0x1140   :  { %v3918_v41 = vpop.permute.xlu0 %3917 }
0x1141   :  { %v3920_v30 = vunpack.i.h.bf16 %v3918_v41  ;;  %v3919_v46 = vunpack.i.l.bf16 %v3918_v41 }
0x1143   :  { %v2908_v18 = vsel %vm330_vm3, %v2571_v8, %v3920_v30  ;;  %v2907_v12 = vsel %vm330_vm3, %v2568_v60, %v3919_v46 }
0x1144   :  { %v3923_v31 = vpop.permute.xlu1 %3922 }
0x1145   :  { %v3925_v19 = vunpack.i.h.bf16 %v3923_v31  ;;  %v3924_v24 = vunpack.i.l.bf16 %v3923_v31  ;;  %v3965_v31 = vld [vmem:[%s5197_s3 + $0x34] ss:$8 sps:$4 sm:$0xff]  }
0x1146   :  { %3793 = vmatprep.subr.bf16.mxu1 %v3965_v31 }
0x1147   :  { %v2906_v0 = vsel %vm330_vm3, %v2524_v55, %v3925_v19  ;;  %v2905_v8 = vsel %vm330_vm3, %v5073_v2, %v3924_v24  ;;  %3794 = vmatpush3.bf16.msra.mxu1 %v3965_v31 }
0x1148   :  { %v3928_v59 = vpop.permute.xlu0 %3927 }
0x1149   :  { %v3930_v61 = vunpack.i.h.bf16 %v3928_v59  ;;  %v3929_v52 = vunpack.i.l.bf16 %v3928_v59 }
0x114b   :  { %v2911_v20 = vsel %vm728_vm4, %v2907_v12, %v3929_v52  ;;  %v2912_v9 = vsel %vm728_vm4, %v2908_v18, %v3930_v61 }
0x114c   :  { %v2920_v23 = vpop.permute.xlu0 %2919  ;;  %v3933_v16 = vpop.permute.xlu1 %3932 }
0x114d   :  { %3787 = vmatprep.subr.bf16.mxu0 %v2920_v23  ;;  %v3935_v49 = vunpack.i.h.bf16 %v3933_v16  ;;  %v3934_v11 = vunpack.i.l.bf16 %v3933_v16  ;;  %v3966_v16 = vld [vmem:[%s5197_s3 + $0x24] ss:$8 sps:$4 sm:$0xff]  }
0x114e   :  { %3788 = vmatpush3.bf16.msra.mxu0 %v2920_v23  ;;  %3795 = vmatprep.subr.bf16.mxu1 %v3966_v16 }
0x114f   :  { %v2910_v10 = vsel %vm728_vm4, %v2906_v0, %v3935_v49  ;;  %v2909_v29 = vsel %vm728_vm4, %v2905_v8, %v3934_v11  ;;  %3796 = vmatpush3.bf16.msra.mxu1 %v3966_v16 }
0x118d   :  { %v3938_v63 = vpop.permute.xlu1 %3937 }
0x118e   :  { %v3940_v60 = vunpack.i.h.bf16 %v3938_v63  ;;  %v3939_v42 = vunpack.i.l.bf16 %v3938_v63 }
0x1190   :  { %v2914_v15 = vsel %vm1345_vm5, %v2910_v10, %v3940_v60  ;;  %v2913_v3 = vsel %vm1345_vm5, %v2909_v29, %v3939_v42 }
0x1191   :  { %v2917_v45 = vpack.c.bf16 %v2914_v15, %v2913_v3  ;;  %v3943_v39 = vpop.permute.xlu1 %3942 }
0x1192   :  { %v3945_v33 = vunpack.i.h.bf16 %v3943_v39  ;;  %v3944_v25 = vunpack.i.l.bf16 %v3943_v39  ;;  %v5138_v39 = vld [vmem:[%s5199_s5 + $0x8] sm:$0xff] }
0x1193   :  { %3789 = vmatprep.mubr.msk.bf16.mxu0 %vm136_vm1, %v2917_v45 }
0x1194   :  { %v2915_v55 = vsel %vm1345_vm5, %v2911_v20, %v3944_v25  ;;  %v2916_v2 = vsel %vm1345_vm5, %v2912_v9, %v3945_v33  ;;  %v3047_v33 = vrot.slane %v5138_v39, %v1479_v50 }
0x1195   :  { %v2918_v28 = vpack.c.bf16 %v2916_v2, %v2915_v55 }
0x1197   :  { %3790 = vmatmul.mubr.msk.bf16.vlgmr.msra.gmra.mxu0 %vm136_vm1, %v2918_v28 }
0x1257   :  { %v3791_v57 = vpop.f32.mrf.mxu0 }
0x1258   :  { %v2982_v51 = vadd.f32 %v3791_v57, %v4723_v44 }
0x1259   :  { %v2965_v34 = vpop.f32.mrf.mxu0 }
0x125a   :  { %v2980_v47 = vadd.f32 %v2965_v34, %v4721_v48  ;;  %v5105_v6 = vadd.f32 %v2987_v43, %v2982_v51  ;;  %v3055_v34 = vrot.slane %v5138_v39, %v1487_v35  ;;  %v3968_v35 = vld [vmem:[%s5198_s4 + $0x30] sm:$0xff]  }
0x125b   :  { %v3792_v53 = vpop.f32.mrf.mxu0 }
0x125c   :  { %v5103_v32 = vadd.f32 %v2987_v43, %v2980_v47  ;;  %v2983_v38 = vadd.f32 %v3792_v53, %v4731_v26  ;;  %v2998_v58 = vsel %vm136_vm1, %v5105_v6, 0.0 }
0x125d   :  { %v2968_v1 = vpop.f32.mrf.mxu0 }
0x125e   :  { %v2981_v7 = vadd.f32 %v2968_v1, %v4729_v5  ;;  %v2992_v21 = vsel %vm136_vm1, %v5103_v32, 0.0  ;;  %v5113_v14 = vadd.f32 %v2987_v43, %v2983_v38 }
0x125f   :  { %2993 = vadd.xlane.f32.xlu0 %v2992_v21 }
0x1260   :  { %v5111_v44 = vadd.f32 %v2987_v43, %v2981_v7  ;;  %v3001_v26 = vsel %vm136_vm1, %v5113_v14, 0.0 }
0x1262   :  { %v2995_v48 = vsel %vm136_vm1, %v5111_v44, 0.0 }
0x1263   :  { %2999 = vadd.xlane.f32.xlu0 %v2998_v58  ;;  %2996 = vadd.xlane.f32.xlu1 %v2995_v48 }
0x1267   :  { %3002 = vadd.xlane.f32.xlu0 %v3001_v26  ;;  %v3967_v26 = vld [vmem:[%s5198_s4 + $0x38] sm:$0xff]  }
0x1268   :  { %3801 = vmatprep.subr.bf16.mxu0 %v3967_v26 }
0x1269   :  { %3802 = vmatpush3.bf16.msra.mxu0 %v3967_v26 }
0x126a   :  { %3803 = vmatprep.subr.bf16.mxu0 %v3968_v35 }
0x126d   :  { %3804 = vmatpush3.bf16.msra.mxu0 %v3968_v35 }
0x12e8   :  { %v2994_v5 = vpop.xlane.xlu0 %2993 }
0x12e9   :  { %v3004_v36 = vmul.f32 0.03125, %v2994_v5  ;;  %v3969_v5 = vld [vmem:[%s5198_s4 + $0x28] sm:$0xff]  }
0x12ea   :  { %3805 = vmatprep.subr.bf16.mxu0 %v3969_v5 }
0x12eb   :  { %v3008_v54 = vsub.f32 %v5103_v32, %v3004_v36  ;;  %v3970_v36 = vld [vmem:[%s5198_s4 + $0x20] sm:$0xff]   ;;  %3806 = vmatpush3.bf16.msra.mxu0 %v3969_v5 }
0x12ec   :  { %v3000_v62 = vpop.xlane.xlu0 %2999  ;;  %v2997_v40 = vpop.xlane.xlu1 %2996  ;;  %3807 = vmatprep.subr.bf16.mxu0 %v3970_v36 }
0x12ed   :  { %v3006_v22 = vmul.f32 0.03125, %v3000_v62  ;;  %v3005_v27 = vmul.f32 0.03125, %v2997_v40  ;;  %v3012_v4 = vmul.f32 %v3008_v54, %v3008_v54 }
0x12ef   :  { %v3010_v17 = vsub.f32 %v5105_v6, %v3006_v22  ;;  %v3009_v41 = vsub.f32 %v5111_v44, %v3005_v27  ;;  %v3016_v30 = vsel %vm136_vm1, %v3012_v4, 0.0  ;;  %3808 = vmatpush3.bf16.msra.mxu0 %v3970_v36 }
0x12f0   :  { %3017 = vadd.xlane.f32.xlu0 %v3016_v30  ;;  %v3003_v46 = vpop.xlane.xlu0 %3002 }
0x12f1   :  { %v3007_v59 = vmul.f32 0.03125, %v3003_v46  ;;  %v3014_v61 = vmul.f32 %v3010_v17, %v3010_v17  ;;  %v3013_v52 = vmul.f32 %v3009_v41, %v3009_v41 }
0x12f3   :  { %v3011_v18 = vsub.f32 %v5113_v14, %v3007_v59  ;;  %v3022_v12 = vsel %vm136_vm1, %v3014_v61, 0.0  ;;  %v3019_v20 = vsel %vm136_vm1, %v3013_v52, 0.0 }
0x12f4   :  { %3023 = vadd.xlane.f32.xlu0 %v3022_v12  ;;  %3020 = vadd.xlane.f32.xlu1 %v3019_v20 }
0x12f5   :  { %v3015_v9 = vmul.f32 %v3011_v18, %v3011_v18 }
0x12f7   :  { %v3025_v23 = vsel %vm136_vm1, %v3015_v9, 0.0 }
0x12f8   :  { %3026 = vadd.xlane.f32.xlu1 %v3025_v23 }
0x1379   :  { %v3018_v19 = vpop.xlane.xlu0 %3017 }
0x137a   :  { %v3028_v24 = vmul.f32 0.03125, %v3018_v19 }
0x137c   :  { %v3032_v49 = vadd.f32 1e-06, %v3028_v24 }
0x137d   :  { %v3024_v11 = vpop.xlane.xlu0 %3023  ;;  %v3021_v63 = vpop.xlane.xlu1 %3020 }
0x137e   :  { %4131 = vrsqrt.f32 %v3032_v49  ;;  %v3030_v0 = vmul.f32 0.03125, %v3024_v11  ;;  %v3029_v8 = vmul.f32 0.03125, %v3021_v63 }
0x1380   :  { %v3034_v60 = vadd.f32 1e-06, %v3030_v0  ;;  %v3033_v42 = vadd.f32 1e-06, %v3029_v8 }
0x1381   :  { %v3027_v10 = vpop.xlane.xlu1 %3026 }
0x1382   :  { %4133 = vrsqrt.f32 %v3034_v60  ;;  %v3031_v29 = vmul.f32 0.03125, %v3027_v10 }
0x1383   :  { %4135 = vrsqrt.f32 %v3033_v42 }
0x1384   :  { %v3035_v15 = vadd.f32 1e-06, %v3031_v29 }
0x1386   :  { %4137 = vrsqrt.f32 %v3035_v15 }
0x138b   :  { %v4132_v3 = vpop.eup %4131 }
0x138c   :  { %v3040_v45 = vmul.f32 %v4132_v3, %v3008_v54  ;;  %v3065_v54 = vrot.slane %v5138_v39, %v1497_v37 }
0x138e   :  { %v3048_v57 = vmul.f32 %v3047_v33, %v3040_v45 }
0x138f   :  { %v4134_v25 = vpop.eup %4133 }
0x1390   :  { %v4136_v55 = vpop.eup %4135  ;;  %v3042_v2 = vmul.f32 %v4134_v25, %v3010_v17  ;;  %v3056_v1 = vadd.f32 %v3055_v34, %v3048_v57 }
0x1391   :  { %v3041_v28 = vmul.f32 %v4136_v55, %v3009_v41 }
0x1392   :  { %v3050_v53 = vmul.f32 %v3047_v33, %v3042_v2 }
0x1393   :  { %v4138_v51 = vpop.eup %4137  ;;  %v3049_v43 = vmul.f32 %v3047_v33, %v3041_v28 }
0x1394   :  { %v3043_v47 = vmul.f32 %v4138_v51, %v3011_v18  ;;  %v3058_v58 = vadd.f32 %v3055_v34, %v3050_v53 }
0x1395   :  { %v3057_v38 = vadd.f32 %v3055_v34, %v3049_v43 }
0x1396   :  { %v3051_v7 = vmul.f32 %v3047_v33, %v3043_v47 }
0x1397   :  { %v3060_v21 = vpack.c.bf16 %v3057_v38, %v3056_v1 }
0x1398   :  { %v3059_v48 = vadd.f32 %v3055_v34, %v3051_v7 }
0x1399   :  { %3797 = vmatprep.mubr.msk.bf16.mxu1 %vm136_vm1, %v3060_v21 }
0x139a   :  { %v3061_v50 = vpack.c.bf16 %v3059_v48, %v3058_v58  ;;  %v3253_v58 = vrot.slane %v5138_v39, %v1686_v13 }
0x139c   :  { %3798 = vmatmul.mubr.msk.bf16.vlgmr.msra.gmra.mxu1 %vm136_vm1, %v3061_v50 }
0x145c   :  { %v3799_v62 = vpop.f32.mrf.mxu1 }
0x145d   :  { %v3123_v40 = vadd.f32 %v3799_v62, %v3065_v54 }
0x145e   :  { %v3114_v22 = vpop.f32.mrf.mxu1 }
0x145f   :  { %v3135_v27 = vmul.f32 0.044715, %v3123_v40  ;;  %v3115_v4 = vadd.f32 %v3114_v22, %v3065_v54  ;;  %v3131_v57 = vmul.f32 0.5, %v3123_v40 }
0x1460   :  { %v3800_v17 = vpop.f32.mrf.mxu1 }
0x1461   :  { %v3139_v41 = vmul.f32 %v3135_v27, %v3123_v40  ;;  %v3133_v30 = vmul.f32 0.044715, %v3115_v4  ;;  %v3126_v46 = vadd.f32 %v3800_v17, %v3065_v54  ;;  %v3129_v55 = vmul.f32 0.5, %v3115_v4 }
0x1462   :  { %v3117_v59 = vpop.f32.mrf.mxu1 }
0x1463   :  { %v3143_v61 = vmul.f32 %v3139_v41, %v3123_v40  ;;  %v3137_v52 = vmul.f32 %v3133_v30, %v3115_v4  ;;  %v3136_v18 = vmul.f32 0.044715, %v3126_v46  ;;  %v3118_v12 = vadd.f32 %v3117_v59, %v3065_v54 }
0x1464   :  { %v3132_v33 = vmul.f32 0.5, %v3126_v46 }
0x1465   :  { %v3147_v20 = vadd.f32 %v3143_v61, %v3123_v40  ;;  %v3141_v9 = vmul.f32 %v3137_v52, %v3115_v4  ;;  %v3140_v23 = vmul.f32 %v3136_v18, %v3126_v46  ;;  %v3134_v31 = vmul.f32 0.044715, %v3118_v12 }
0x1466   :  { %v3130_v2 = vmul.f32 0.5, %v3118_v12 }
0x1467   :  { %v3151_v16 = vmul.f32 0.7978846, %v3147_v20  ;;  %v3145_v37 = vadd.f32 %v3141_v9, %v3115_v4  ;;  %v3144_v19 = vmul.f32 %v3140_v23, %v3126_v46  ;;  %v3138_v24 = vmul.f32 %v3134_v31, %v3118_v12 }
0x1469   :  { %v3149_v49 = vmul.f32 0.7978846, %v3145_v37  ;;  %v3148_v11 = vadd.f32 %v3144_v19, %v3126_v46  ;;  %v3142_v63 = vmul.f32 %v3138_v24, %v3118_v12  ;;  %4139 = vtanh.f32 %v3151_v16 }
0x146b   :  { %v3152_v0 = vmul.f32 0.7978846, %v3148_v11  ;;  %4141 = vtanh.f32 %v3149_v49  ;;  %v3146_v8 = vadd.f32 %v3142_v63, %v3118_v12 }
0x146d   :  { %4143 = vtanh.f32 %v3152_v0  ;;  %v3150_v60 = vmul.f32 0.7978846, %v3146_v8 }
0x146f   :  { %4145 = vtanh.f32 %v3150_v60 }
0x1476   :  { %v4140_v42 = vpop.eup %4139 }
0x1477   :  { %v3159_v25 = vadd.f32 1.0, %v4140_v42 }
0x1478   :  { %v4142_v10 = vpop.eup %4141 }
0x1479   :  { %v3157_v3 = vadd.f32 1.0, %v4142_v10  ;;  %v3163_v47 = vmul.f32 %v3159_v25, %v3131_v57 }
0x147a   :  { %v4144_v29 = vpop.eup %4143 }
0x147b   :  { %v3160_v15 = vadd.f32 1.0, %v4144_v29  ;;  %v3161_v51 = vmul.f32 %v3157_v3, %v3129_v55  ;;  %v3432_v3 = vld [vmem:[%s5195_s1 + $0x20] ss:$0 sm:$0xff] }
0x147c   :  { %v4146_v45 = vpop.eup %4145 }
0x147d   :  { %v3158_v28 = vadd.f32 1.0, %v4146_v45  ;;  %v3164_v34 = vmul.f32 %v3160_v15, %v3132_v33  ;;  %v3433_v33 = vld [vmem:[%s5195_s1 + $0x21] ss:$0 sm:$0xff]  ;;  %s4157_s1 = scalar_lea.vmem %s3338_s13, 512 }
0x147e   :  { %p4158_p0 = scmp.ne.s32.totalorder %s3338_s13, %s4157_s1  ;;  %p4163_p2 = scmp.lt.s32.totalorder %s4157_s1, %s4157_s1 }
0x147f   :  { %v3162_v43 = vmul.f32 %v3158_v28, %v3130_v2  ;;  %v3166_v1 = vpack.c.bf16 %v3164_v34, %v3163_v47 }
0x1480   :  { %p4164_p3 = por %p4163_p2, %p4162_p1 }
0x1481   :  { %v3165_v53 = vpack.c.bf16 %v3162_v43, %v3161_v51 }
0x1482   :  { %p4165_p4 = pnand %p4164_p3, %p4158_p0 }
0x1483   :  { %3809 = vmatprep.mubr.msk.bf16.mxu0 %vm1624_vm6, %v3165_v53 }
0x1484   :  { %3810 = vmatmul.mubr.msk.bf16.vlgmr.msra.gmra.mxu0 %vm1624_vm6, %v3166_v1 }
0x1544   :  { %v3811_v38 = vpop.f32.mrf.mxu0 }
0x1545   :  { %v3248_v21 = vadd.f32 %v3811_v38, %v5105_v6 }
0x1546   :  { %v3231_v7 = vpop.f32.mrf.mxu0 }
0x1547   :  { %v3246_v48 = vadd.f32 %v3231_v7, %v5103_v32  ;;  %v3256_v5 = vadd.f32 %v3253_v58, %v3248_v21 }
0x1548   :  { %v3812_v50 = vpop.f32.mrf.mxu0 }
0x1549   :  { %v3254_v26 = vadd.f32 %v3253_v58, %v3246_v48  ;;  %v3249_v36 = vadd.f32 %v3812_v50, %v5113_v14  ;;  %v3266_v6 = vsel %vm136_vm1, %v3256_v5, 0.0 }
0x154a   :  { %v3234_v35 = vpop.f32.mrf.mxu0 }
0x154b   :  { %v3247_v54 = vadd.f32 %v3234_v35, %v5111_v44  ;;  %v3260_v62 = vsel %vm136_vm1, %v3254_v26, 0.0  ;;  %v3257_v22 = vadd.f32 %v3253_v58, %v3249_v36 }
0x154c   :  { %3261 = vadd.xlane.f32.xlu0 %v3260_v62 }
0x154d   :  { %v3255_v40 = vadd.f32 %v3253_v58, %v3247_v54  ;;  %v3269_v13 = vsel %vm136_vm1, %v3257_v22, 0.0 }
0x154f   :  { %v3263_v56 = vsel %vm136_vm1, %v3255_v40, 0.0 }
0x1550   :  { %3267 = vadd.xlane.f32.xlu0 %v3266_v6  ;;  %3264 = vadd.xlane.f32.xlu1 %v3263_v56 }
0x1554   :  { %3270 = vadd.xlane.f32.xlu1 %v3269_v13 }
0x15d5   :  { %v3262_v32 = vpop.xlane.xlu0 %3261 }
0x15d6   :  { %v3272_v39 = vmul.f32 0.03125, %v3262_v32 }
0x15d8   :  { %v3276_v27 = vsub.f32 %v3254_v26, %v3272_v39 }
0x15d9   :  { %v3268_v14 = vpop.xlane.xlu0 %3267  ;;  %v3265_v4 = vpop.xlane.xlu1 %3264 }
0x15da   :  { %v3274_v44 = vmul.f32 0.03125, %v3268_v14  ;;  %v3273_v17 = vmul.f32 0.03125, %v3265_v4  ;;  %v3280_v41 = vmul.f32 %v3276_v27, %v3276_v27 }
0x15dc   :  { %v3278_v30 = vsub.f32 %v3256_v5, %v3274_v44  ;;  %v3277_v46 = vsub.f32 %v3255_v40, %v3273_v17  ;;  %v3284_v59 = vsel %vm136_vm1, %v3280_v41, 0.0 }
0x15dd   :  { %3285 = vadd.xlane.f32.xlu0 %v3284_v59  ;;  %v3271_v61 = vpop.xlane.xlu1 %3270 }
0x15de   :  { %v3275_v52 = vmul.f32 0.03125, %v3271_v61  ;;  %v3282_v18 = vmul.f32 %v3278_v30, %v3278_v30  ;;  %v3281_v12 = vmul.f32 %v3277_v46, %v3277_v46 }
0x15e0   :  { %v3279_v20 = vsub.f32 %v3257_v22, %v3275_v52  ;;  %v3290_v9 = vsel %vm136_vm1, %v3282_v18, 0.0  ;;  %v3287_v23 = vsel %vm136_vm1, %v3281_v12, 0.0 }
0x15e1   :  { %3291 = vadd.xlane.f32.xlu0 %v3290_v9  ;;  %3288 = vadd.xlane.f32.xlu1 %v3287_v23 }
0x15e2   :  { %v3283_v31 = vmul.f32 %v3279_v20, %v3279_v20 }
0x15e4   :  { %v3293_v16 = vsel %vm136_vm1, %v3283_v31, 0.0 }
0x15e5   :  { %3294 = vadd.xlane.f32.xlu1 %v3293_v16 }
0x1666   :  { %v3286_v37 = vpop.xlane.xlu0 %3285 }
0x1667   :  { %v3296_v19 = vmul.f32 0.03125, %v3286_v37 }
0x1669   :  { %v3300_v24 = vadd.f32 1e-06, %v3296_v19 }
0x166a   :  { %v3292_v49 = vpop.xlane.xlu0 %3291  ;;  %v3289_v11 = vpop.xlane.xlu1 %3288 }
0x166b   :  { %4147 = vrsqrt.f32 %v3300_v24  ;;  %v3298_v63 = vmul.f32 0.03125, %v3292_v49  ;;  %v3297_v0 = vmul.f32 0.03125, %v3289_v11 }
0x166d   :  { %v3302_v8 = vadd.f32 1e-06, %v3298_v63  ;;  %v3301_v60 = vadd.f32 1e-06, %v3297_v0 }
0x166e   :  { %v3295_v42 = vpop.xlane.xlu1 %3294 }
0x166f   :  { %4149 = vrsqrt.f32 %v3302_v8  ;;  %v3299_v10 = vmul.f32 0.03125, %v3295_v42 }
0x1670   :  { %4151 = vrsqrt.f32 %v3301_v60 }
0x1671   :  { %v3303_v29 = vadd.f32 1e-06, %v3299_v10 }
0x1673   :  { %4153 = vrsqrt.f32 %v3303_v29 }
0x1678   :  { %v4148_v15 = vpop.eup %4147 }
0x1679   :  { %v3308_v45 = vmul.f32 %v4148_v15, %v3276_v27 }
0x167b   :  { %v3316_v25 = vmul.f32 %v3432_v3, %v3308_v45 }
0x167c   :  { %v4150_v55 = vpop.eup %4149 }
0x167d   :  { %v4152_v2 = vpop.eup %4151  ;;  %v3310_v28 = vmul.f32 %v4150_v55, %v3278_v30  ;;  %v3324_v57 = vadd.f32 %v3433_v33, %v3316_v25 }
0x167e   :  { %v3309_v34 = vmul.f32 %v4152_v2, %v3277_v46 }
0x167f   :  { %v3318_v51 = vmul.f32 %v3432_v3, %v3310_v28  ;;  %3328 = vst.msk [vmem:[#allocation2] sm:$0xff] %vm136_vm1, %v3324_v57 }
0x1680   :  { %v4154_v43 = vpop.eup %4153  ;;  %v3317_v47 = vmul.f32 %v3432_v3, %v3309_v34 }
0x1681   :  { %v3311_v53 = vmul.f32 %v4154_v43, %v3279_v20  ;;  %v3326_v1 = vadd.f32 %v3433_v33, %v3318_v51 }
0x1682   :  { %v3325_v38 = vadd.f32 %v3433_v33, %v3317_v47 }
0x1683   :  { %v3319_v7 = vmul.f32 %v3432_v3, %v3311_v53  ;;  %3330 = vst.msk [vmem:[#allocation2 + $0x10] sm:$0xff] %vm136_vm1, %v3326_v1 }
0x1684   :  { %3329 = vst.msk [vmem:[#allocation2 + $0x8] sm:$0xff] %vm136_vm1, %v3325_v38 }
0x1685   :  { %v3327_v21 = vadd.f32 %v3433_v33, %v3319_v7 }
0x1687   :  { %3331 = vst.msk [vmem:[#allocation2 + $0x18] sm:$0xff] %vm136_vm1, %v3327_v21 }
0x1688   :  { %4168 = shalt.err (!%p4165_p4)
}
0x1689   :  { %s4191_s14 = smov 128  }
0x168a   :  { %3343 = dma.vmem_to_hbm [thread:$0]  %s3338_s13, 512, %s5200_s6, [#allocation3], %s4191_s14, %s4191_s14, %s4187_s25  }
0x168b   :  { %4177 = dma.done.wait [#allocation3], 512  }
0x168c   :  { %4178 = vsyncadd [#allocation3], 4294966784 }
0x168d   :  { %3347 = vsyncpa [#allocation3], 1 }

</bundles_post_ra>
